<compile_context>
chip_gen: v5e
topology: v5e:2x2
jax: 0.10.0
libtpu: 0.0.40
codegen_flags: <defaults>
</compile_context>

<pallas_src>
import functools
import math

import jax
import jax.numpy as jnp
from jax import lax
from jax.experimental import pallas as pl
from jax.experimental.pallas import tpu as pltpu


def _const_spec(shape):
    """BlockSpec for a grid-invariant operand; single-buffered when supported."""
    index_map = lambda i: (0,) * len(shape)
    try:
        return pl.BlockSpec(shape, index_map, pipeline_mode=pl.Buffered(1))
    except TypeError:  # BlockSpec without pipeline_mode support
        return pl.BlockSpec(shape, index_map)


# ---------------------------------------------------------------------------
# Kernel 1: fused ResnetBlock1d  (GN+SiLU+Conv3) x2 + residual  [+ 1x1 to_out]
# ---------------------------------------------------------------------------

def _resblock_kernel(x_ref, A_ref, gn_ref, w_ref, b_ref, *rest,
                     eps, L, C, fuse_out):
    # x_ref : (1, L, C) bf16       A_ref : (C, C) f32 group-average matrix
    # gn_ref: (4, C) f32 [g1,b1,g2,b2]
    # w_ref : (2, 3C, C) bf16 tap-folded conv weights   b_ref: (2, C) f32
    # [wo_ref: (C, Co) bf16, bo_ref: (1, Co) f32]  (fused Encoder1d.to_out)
    # hp_ref: (L+2, C) f32 zero-padded conv-input scratch
    if fuse_out:
        wo_ref, bo_ref, o_ref, oo_ref, hp_ref = rest
    else:
        o_ref, hp_ref = rest

    A = A_ref[...]                                        # (C, C)

    # zero the two padding rows once; conv3 only ever writes rows 1..L
    hp_ref[0:1, :] = jnp.zeros((1, C), jnp.float32)
    hp_ref[L + 1:L + 2, :] = jnp.zeros((1, C), jnp.float32)

    def gn_silu(h, g_row, b_row):
        # two-pass (centered) GroupNorm statistics, all f32 on the VPU/EUP
        s1 = jnp.sum(h, axis=0, keepdims=True)                        # (1, C)
        mean = jnp.dot(s1, A, preferred_element_type=jnp.float32)
        d = h - mean
        s2 = jnp.sum(d * d, axis=0, keepdims=True)
        var = jnp.dot(s2, A, preferred_element_type=jnp.float32)
        y = (d * lax.rsqrt(var + eps) * gn_ref[g_row:g_row + 1, :]
             + gn_ref[b_row:b_row + 1, :])
        return y * jax.nn.sigmoid(y)                                  # SiLU

    def conv3(h, i):
        # Conv1d(k=3, s=1, p=1) as ONE MXU push: lane-concat of the three
        # shifted taps -> (L, 3C) operand, contraction depth 3C.
        hp_ref[1:L + 1, :] = h
        cat = jnp.concatenate(
            [hp_ref[0:L, :], h, hp_ref[2:L + 2, :]], axis=-1)         # (L, 3C)
        return (jnp.dot(cat.astype(jnp.bfloat16), w_ref[i],
                        preferred_element_type=jnp.float32)
                + b_ref[i:i + 1, :])

    h = conv3(gn_silu(x_ref[0].astype(jnp.float32), 0, 1), 0)
    h = conv3(gn_silu(h, 2, 3), 1) + x_ref[0].astype(jnp.float32)     # residual
    o_ref[0] = h.astype(o_ref.dtype)

    if fuse_out:
        # fused Encoder1d.to_out (1x1 conv) epilogue: saves an HBM round trip
        y = (jnp.dot(h.astype(jnp.bfloat16), wo_ref[...],
                     preferred_element_type=jnp.float32) + bo_ref[...])
        oo_ref[0] = y.astype(oo_ref.dtype)


def resnet_block(x, A, gn, w, b, out_w=None, out_b=None, *, eps=1e-5):
    """x: (B,L,C) bf16; A: (C,C) f32; gn: (4,C) f32; w: (2,3C,C) bf16; b: (2,C) f32."""
    B, L, C = x.shape
    fuse_out = out_w is not None

    in_specs = [
        pl.BlockSpec((1, L, C), lambda i: (i, 0, 0)),
        _const_spec((C, C)),
        _const_spec((4, C)),
        _const_spec((2, 3 * C, C)),
        _const_spec((2, C)),
    ]
    args = [x, A, gn, w, b]
    out_shape = jax.ShapeDtypeStruct((B, L, C), jnp.bfloat16)
    out_specs = pl.BlockSpec((1, L, C), lambda i: (i, 0, 0))
    if fuse_out:
        Co = out_w.shape[-1]
        in_specs += [_const_spec((C, Co)), _const_spec((1, Co))]
        args += [out_w, out_b]
        out_shape = (out_shape, jax.ShapeDtypeStruct((B, L, Co), jnp.bfloat16))
        out_specs = (out_specs, pl.BlockSpec((1, L, Co), lambda i: (i, 0, 0)))

    kern = functools.partial(_resblock_kernel, eps=eps, L=L, C=C,
                             fuse_out=fuse_out)
    return pl.pallas_call(
        kern,
        grid=(B,),
        in_specs=in_specs,
        out_specs=out_specs,
        out_shape=out_shape,
        scratch_shapes=[pltpu.VMEM((L + 2, C), jnp.float32)],
        compiler_params=pltpu.CompilerParams(dimension_semantics=("parallel",)),
    )(*args)


# ---------------------------------------------------------------------------
# Kernel 2: strided Conv1d (WAVenc1d stand-in, Downsample1d, 1x1 fallbacks)
#   - zero padding done in-kernel (VMEM scratch), no jnp.pad HBM copy
#   - all K taps fused into a single matmul with contraction depth K*Ci
# ---------------------------------------------------------------------------

def _conv_kernel(*refs, K, S, P, L, Ci, L_out, Lpad, has_bias):
    if has_bias:
        x_ref, w_ref, b_ref, o_ref, hp_ref = refs
    else:
        x_ref, w_ref, o_ref, hp_ref = refs

    # in-kernel zero padding of the activation
    if P > 0:
        hp_ref[0:P, :] = jnp.zeros((P, Ci), jnp.float32)
    hp_ref[P:P + L, :] = x_ref[0].astype(jnp.float32)
    if Lpad > P + L:
        hp_ref[P + L:Lpad, :] = jnp.zeros((Lpad - P - L, Ci), jnp.float32)

    # im2col: tap k needs padded rows k, k+S, ... -> strided sublane reads,
    # lane-concatenated into one (L_out, K*Ci) operand => single MXU push.
    taps = [hp_ref[pl.ds(k, L_out, stride=S), :] for k in range(K)]
    cat = taps[0] if K == 1 else jnp.concatenate(taps, axis=-1)
    acc = jnp.dot(cat.astype(jnp.bfloat16), w_ref[...],
                  preferred_element_type=jnp.float32)
    if has_bias:
        acc = acc + b_ref[...]
    o_ref[0] = acc.astype(o_ref.dtype)


def conv1d(x, w, b=None, *, stride=1, padding=0):
    """x: (B, L, Ci) channels-last; w: (Co, Ci, K) f32 (PyTorch Conv1d layout)."""
    B, L, Ci = x.shape
    Co, Ci_w, K = w.shape
    assert Ci_w == Ci
    S, P = stride, padding
    L_out = (L + 2 * P - K) // S + 1
    Lpad = max(P + L, (L_out - 1) * S + K)

    # fold taps into the contraction axis: row k*Ci+ci of wf == w[co, ci, k]
    wf = jnp.transpose(w, (2, 1, 0)).reshape(K * Ci, Co).astype(jnp.bfloat16)

    has_bias = b is not None
    args = [x, wf]
    in_specs = [pl.BlockSpec((1, L, Ci), lambda i: (i, 0, 0)),
                _const_spec((K * Ci, Co))]
    if has_bias:
        args.append(b.astype(jnp.float32).reshape(1, Co))
        in_specs.append(_const_spec((1, Co)))

    kern = functools.partial(_conv_kernel, K=K, S=S, P=P, L=L, Ci=Ci,
                             L_out=L_out, Lpad=Lpad, has_bias=has_bias)
    return pl.pallas_call(
        kern,
        grid=(B,),
        in_specs=in_specs,
        out_specs=pl.BlockSpec((1, L_out, Co), lambda i: (i, 0, 0)),
        out_shape=jax.ShapeDtypeStruct((B, L_out, Co), jnp.bfloat16),
        scratch_shapes=[pltpu.VMEM((Lpad, Ci), jnp.float32)],
        compiler_params=pltpu.CompilerParams(dimension_semantics=("parallel",)),
    )(*args)


# ---------------------------------------------------------------------------
# Parameter init (deterministic, PyTorch-like uniform fan-in init)
# ---------------------------------------------------------------------------

def _conv_params(key, co, ci, k, bias=True):
    kw, kb = jax.random.split(key)
    bound = 1.0 / math.sqrt(ci * k)
    w = jax.random.uniform(kw, (co, ci, k), jnp.float32, -bound, bound)
    b = jax.random.uniform(kb, (co,), jnp.float32, -bound, bound) if bias else None
    return {"w": w, "b": b}


def _fold_taps(w):
    """(Co, Ci, K) -> (K*Ci, Co): contraction row k*Ci+ci multiplies tap k, channel ci."""
    co, ci, k = w.shape
    return jnp.transpose(w, (2, 1, 0)).reshape(k * ci, co)


def _resblock_params(key, c):
    k1, k2 = jax.random.split(key)
    c1 = _conv_params(k1, c, c, 3)
    c2 = _conv_params(k2, c, c, 3)
    gn = jnp.stack([jnp.ones(c), jnp.zeros(c),
                    jnp.ones(c), jnp.zeros(c)]).astype(jnp.float32)
    w = jnp.stack([_fold_taps(c1["w"]),
                   _fold_taps(c2["w"])]).astype(jnp.bfloat16)   # (2, 3c, c)
    b = jnp.stack([c1["b"], c2["b"]]).astype(jnp.float32)       # (2, c)
    return {"gn": gn, "w": w, "b": b}


def _group_avg(C, G, L):
    """(C, C) matrix: A[ci, cj] = 1/(L*Cg) if ci and cj are in the same group."""
    Cg = C // G
    idx = jnp.arange(C)
    same = (idx[:, None] // Cg) == (idx[None, :] // Cg)
    return same.astype(jnp.float32) / float(L * Cg)


def init_encoder1d(key, *, num_filters, window_length, stride, in_channels,
                   channels, multipliers, factors, num_blocks,
                   resnet_groups=8, out_channels=None):
    num_layers = len(multipliers) - 1
    assert len(factors) == num_layers and len(num_blocks) == num_layers
    assert num_filters == channels * multipliers[0]
    keys = iter(jax.random.split(key, 256))

    params = {"resnet_groups": resnet_groups, "num_layers": num_layers}
    params["to_in"] = dict(
        _conv_params(next(keys), num_filters, in_channels, window_length, bias=False),
        stride=stride, padding=window_length // 2)

    downs = []
    for i in range(num_layers):
        cin = channels * multipliers[i]
        cout = channels * multipliers[i + 1]
        f = factors[i]
        downs.append({
            "downsample": dict(_conv_params(next(keys), cout, cin, 2 * f + 1),
                               stride=f, padding=f),
            "blocks": [_resblock_params(next(keys), cout) for _ in range(num_blocks[i])],
        })
    params["downsamples"] = downs
    params["to_out"] = (_conv_params(next(keys), out_channels, channels * multipliers[-1], 1)
                        if out_channels is not None else None)
    return params


# ---------------------------------------------------------------------------
# Forward passes
# ---------------------------------------------------------------------------

def encoder1d_xs(params, x_ncl):
    """x_ncl: (B, C_in, L). Returns Encoder1d's info['xs'][1:] (channels-last, bf16)."""
    G = params["resnet_groups"]
    x = jnp.transpose(x_ncl, (0, 2, 1)).astype(jnp.bfloat16)    # (B, L, C_in)
    xs = []

    p = params["to_in"]
    x = conv1d(x, p["w"], None, stride=p["stride"], padding=p["padding"])
    xs.append(x)

    to_out = params["to_out"]
    if to_out is not None:
        wo = _fold_taps(to_out["w"]).astype(jnp.bfloat16)       # (C_last, Co)
        bo = to_out["b"].astype(jnp.float32).reshape(1, -1)
    y = None

    downs = params["downsamples"]
    for li, d in enumerate(downs):
        pd = d["downsample"]
        # TODO(synk): optionally fuse this downsample conv into the first
        #             resblock of the level to save another HBM round trip.
        x = conv1d(x, pd["w"], pd["b"], stride=pd["stride"], padding=pd["padding"])
        C = x.shape[-1]
        A = _group_avg(C, G, x.shape[1])
        blocks = d["blocks"]
        for bi, rb in enumerate(blocks):
            fuse = (to_out is not None
                    and li == len(downs) - 1 and bi == len(blocks) - 1)
            if fuse:
                x, y = resnet_block(x, A, rb["gn"], rb["w"], rb["b"], wo, bo)
            else:
                x = resnet_block(x, A, rb["gn"], rb["w"], rb["b"])
        xs.append(x)

    if to_out is None:
        y = x                                    # nn.Identity
    elif y is None:                              # no resblock to fuse into
        y = conv1d(x, to_out["w"], to_out["b"], stride=1, padding=0)
    xs.append(y)
    return xs


def discriminator1d_fwd(params, true, fake, use_loss=None):
    num_layers = params["num_layers"]
    if use_loss is None:
        use_loss = [True] * num_layers
    assert len(use_loss) == num_layers
    B = true.shape[0]

    # one encoder pass for true+fake: half the launches, double the grid depth
    xs = encoder1d_xs(params, jnp.concatenate([true, fake], axis=0))

    loss_gs, loss_ds = [], []
    # zip() truncates xs[1:] to num_layers entries, matching the PyTorch code.
    for ul, xc in zip(use_loss, xs):
        if not ul:
            continue
        xc = xc.astype(jnp.float32)
        xt, xf = xc[:B], xc[B:]
        C = xt.shape[-1]
        # chunk(chunks=2, dim=1) in (B, C, L) == split the channel (last) axis here
        score_t, feat_t = xt[..., :C // 2], xt[..., C // 2:]
        score_f, feat_f = xf[..., :C // 2], xf[..., C // 2:]
        loss_gs.append(jnp.mean(jnp.abs(feat_t - feat_f)) - jnp.mean(score_f))
        loss_ds.append(jnp.mean(jax.nn.relu(1.0 - score_t) + jax.nn.relu(1.0 + score_f)))
    loss_g = jnp.mean(jnp.stack(loss_gs))
    loss_d = jnp.mean(jnp.stack(loss_ds))
    return loss_g, loss_d


# ---------------------------------------------------------------------------

if __name__ == "__main__":
    key = jax.random.PRNGKey(0)
    kp, kt, kf = jax.random.split(key, 3)

    B, C_in, L = 2, 2, 64
    cfg = dict(
        num_filters=16, window_length=8, stride=4, in_channels=C_in,
        channels=16, multipliers=[1, 2, 2], factors=[2, 2], num_blocks=[1, 1],
        resnet_groups=8, out_channels=32,
    )
    params = init_encoder1d(kp, **cfg)

    true = jax.random.normal(kt, (B, C_in, L), jnp.float32)
    fake = jax.random.normal(kf, (B, C_in, L), jnp.float32)

    fwd = jax.jit(functools.partial(discriminator1d_fwd, params))
    loss_g, loss_d = fwd(true, fake)
    jax.block_until_ready((loss_g, loss_d))

    assert loss_g.shape == () and loss_d.shape == ()
    assert bool(jnp.isfinite(loss_g)) and bool(jnp.isfinite(loss_d))
    print("KERNEL_OK")
</pallas_src>

<mosaic_0001>
module attributes {stable_mosaic.version = 11 : i64} {
  func.func @_conv_kernel(%arg0: i32, %arg1: memref<1x64x2xbf16, #tpu.memory_space<vmem>>, %arg2: memref<16x16xbf16, #tpu.memory_space<vmem>>, %arg3: memref<1x17x16xbf16, #tpu.memory_space<vmem>>, %arg4: memref<72x2xf32, #tpu.memory_space<vmem>>) attributes {dimension_semantics = [#tpu.dimension_semantics<parallel>], iteration_bounds = array<i64: 4>, scalar_prefetch = 0 : i64, scratch_operands = 1 : i64, tpu.core_type = #tpu.core_type<tc>, window_params = [{transform_indices = @transform_0, window_bounds = array<i64: 1, 64, 2>}, {pipeline_mode = #tpu.pipeline_mode<synchronous>, transform_indices = @transform_1, window_bounds = array<i64: 16, 16>}, {transform_indices = @transform_2, window_bounds = array<i64: 1, 17, 16>}]} {
    %cst = arith.constant 0.000000e+00 : f32
    %0 = vector.broadcast %cst : f32 to vector<4x2xf32>
    %c0 = arith.constant 0 : index
    %c0_0 = arith.constant 0 : index
    %1 = vector.load %arg4[%c0, %c0_0] : memref<72x2xf32, #tpu.memory_space<vmem>>, vector<4x2xf32>
    tpu.vector_store %arg4[%c0, %c0_0], %0 {strides = array<i32>} : memref<72x2xf32, #tpu.memory_space<vmem>>, vector<4x2xf32>,
    %c0_1 = arith.constant 0 : index
    %c0_2 = arith.constant 0 : index
    %c0_3 = arith.constant 0 : index
    %2 = vector.load %arg1[%c0_1, %c0_2, %c0_3] : memref<1x64x2xbf16, #tpu.memory_space<vmem>>, vector<1x64x2xbf16>
    %3 = vector.shape_cast %2 : vector<1x64x2xbf16> to vector<64x2xbf16>
    %4 = arith.extf %3 : vector<64x2xbf16> to vector<64x2xf32>
    %c4 = arith.constant 4 : index
    %c0_4 = arith.constant 0 : index
    %5 = vector.load %arg4[%c4, %c0_4] : memref<72x2xf32, #tpu.memory_space<vmem>>, vector<64x2xf32>
    tpu.vector_store %arg4[%c4, %c0_4], %4 {strides = array<i32>} : memref<72x2xf32, #tpu.memory_space<vmem>>, vector<64x2xf32>,
    %cst_5 = arith.constant 0.000000e+00 : f32
    %6 = vector.broadcast %cst_5 : f32 to vector<4x2xf32>
    %c68 = arith.constant 68 : index
    %c0_6 = arith.constant 0 : index
    %7 = vector.load %arg4[%c68, %c0_6] : memref<72x2xf32, #tpu.memory_space<vmem>>, vector<4x2xf32>
    tpu.vector_store %arg4[%c68, %c0_6], %6 {strides = array<i32>} : memref<72x2xf32, #tpu.memory_space<vmem>>, vector<4x2xf32>,
    %c0_7 = arith.constant 0 : index
    %c0_8 = arith.constant 0 : index
    %8 = tpu.strided_load %arg4[%c0_7, %c0_8] {strides = array<i32: 4, 1>} : memref<72x2xf32, #tpu.memory_space<vmem>>, vector<17x2xf32>
    %c1 = arith.constant 1 : index
    %c0_9 = arith.constant 0 : index
    %9 = tpu.strided_load %arg4[%c1, %c0_9] {strides = array<i32: 4, 1>} : memref<72x2xf32, #tpu.memory_space<vmem>>, vector<17x2xf32>
    %c2 = arith.constant 2 : index
    %c0_10 = arith.constant 0 : index
    %10 = tpu.strided_load %arg4[%c2, %c0_10] {strides = array<i32: 4, 1>} : memref<72x2xf32, #tpu.memory_space<vmem>>, vector<17x2xf32>
    %c3 = arith.constant 3 : index
    %c0_11 = arith.constant 0 : index
    %11 = tpu.strided_load %arg4[%c3, %c0_11] {strides = array<i32: 4, 1>} : memref<72x2xf32, #tpu.memory_space<vmem>>, vector<17x2xf32>
    %c4_12 = arith.constant 4 : index
    %c0_13 = arith.constant 0 : index
    %12 = tpu.strided_load %arg4[%c4_12, %c0_13] {strides = array<i32: 4, 1>} : memref<72x2xf32, #tpu.memory_space<vmem>>, vector<17x2xf32>
    %c5 = arith.constant 5 : index
    %c0_14 = arith.constant 0 : index
    %13 = tpu.strided_load %arg4[%c5, %c0_14] {strides = array<i32: 4, 1>} : memref<72x2xf32, #tpu.memory_space<vmem>>, vector<17x2xf32>
    %c6 = arith.constant 6 : index
    %c0_15 = arith.constant 0 : index
    %14 = tpu.strided_load %arg4[%c6, %c0_15] {strides = array<i32: 4, 1>} : memref<72x2xf32, #tpu.memory_space<vmem>>, vector<17x2xf32>
    %c7 = arith.constant 7 : index
    %c0_16 = arith.constant 0 : index
    %15 = tpu.strided_load %arg4[%c7, %c0_16] {strides = array<i32: 4, 1>} : memref<72x2xf32, #tpu.memory_space<vmem>>, vector<17x2xf32>
    %16 = tpu.concatenate %8, %9, %10, %11, %12, %13, %14, %15 in 1 : vector<17x2xf32>, vector<17x2xf32>, vector<17x2xf32>, vector<17x2xf32>, vector<17x2xf32>, vector<17x2xf32>, vector<17x2xf32>, vector<17x2xf32> -> vector<17x16xf32>
    %17 = arith.truncf %16 : vector<17x16xf32> to vector<17x16xbf16>
    %c0_17 = arith.constant 0 : index
    %c0_18 = arith.constant 0 : index
    %18 = vector.load %arg2[%c0_17, %c0_18] : memref<16x16xbf16, #tpu.memory_space<vmem>>, vector<16x16xbf16>
    %cst_19 = arith.constant dense<0.000000e+00> : vector<17x16xf32>
    %19 = tpu.matmul %17, %18, %cst_19 {dimension_numbers = #tpu.dot_dimension_numbers<[1], [0], [0], [1], [0, 0, 1, 1], [], []>} : vector<17x16xbf16>, vector<16x16xbf16>, vector<17x16xf32> -> vector<17x16xf32>
    %20 = arith.truncf %19 : vector<17x16xf32> to vector<17x16xbf16>
    %c0_20 = arith.constant 0 : index
    %c0_21 = arith.constant 0 : index
    %c0_22 = arith.constant 0 : index
    %21 = vector.load %arg3[%c0_20, %c0_21, %c0_22] : memref<1x17x16xbf16, #tpu.memory_space<vmem>>, vector<1x17x16xbf16>
    %22 = vector.shape_cast %21 : vector<1x17x16xbf16> to vector<17x16xbf16>
    %23 = vector.shape_cast %20 : vector<17x16xbf16> to vector<1x17x16xbf16>
    tpu.vector_store %arg3[%c0_20, %c0_21, %c0_22], %23 {strides = array<i32>} : memref<1x17x16xbf16, #tpu.memory_space<vmem>>, vector<1x17x16xbf16>,
    return
  }
  func.func @transform_0(%arg0: i32) -> (i32, i32, i32) {
    %c0_i32 = arith.constant 0 : i32
    %c0_i32_0 = arith.constant 0 : i32
    %c0_i32_1 = arith.constant 0 : i32
    return %arg0, %c0_i32, %c0_i32_0 : i32, i32, i32
  }
  func.func @transform_1(%arg0: i32) -> (i32, i32) {
    %c0_i32 = arith.constant 0 : i32
    %c0_i32_0 = arith.constant 0 : i32
    %c0_i32_1 = arith.constant 0 : i32
    return %c0_i32, %c0_i32_0 : i32, i32
  }
  func.func @transform_2(%arg0: i32) -> (i32, i32, i32) {
    %c0_i32 = arith.constant 0 : i32
    %c0_i32_0 = arith.constant 0 : i32
    %c0_i32_1 = arith.constant 0 : i32
    return %arg0, %c0_i32, %c0_i32_0 : i32, i32, i32
  }
}

module attributes {stable_mosaic.version = 11 : i64} {
  func.func @_conv_kernel(%arg0: i32, %arg1: memref<1x17x16xbf16, #tpu.memory_space<vmem>>, %arg2: memref<80x32xbf16, #tpu.memory_space<vmem>>, %arg3: memref<1x32xf32, #tpu.memory_space<vmem>>, %arg4: memref<1x9x32xbf16, #tpu.memory_space<vmem>>, %arg5: memref<21x16xf32, #tpu.memory_space<vmem>>) attributes {dimension_semantics = [#tpu.dimension_semantics<parallel>], iteration_bounds = array<i64: 4>, scalar_prefetch = 0 : i64, scratch_operands = 1 : i64, tpu.core_type = #tpu.core_type<tc>, window_params = [{transform_indices = @transform_0, window_bounds = array<i64: 1, 17, 16>}, {pipeline_mode = #tpu.pipeline_mode<synchronous>, transform_indices = @transform_1, window_bounds = array<i64: 80, 32>}, {pipeline_mode = #tpu.pipeline_mode<synchronous>, transform_indices = @transform_2, window_bounds = array<i64: 1, 32>}, {transform_indices = @transform_3, window_bounds = array<i64: 1, 9, 32>}]} {
    %cst = arith.constant 0.000000e+00 : f32
    %0 = vector.broadcast %cst : f32 to vector<2x16xf32>
    %c0 = arith.constant 0 : index
    %c0_0 = arith.constant 0 : index
    %1 = vector.load %arg5[%c0, %c0_0] : memref<21x16xf32, #tpu.memory_space<vmem>>, vector<2x16xf32>
    tpu.vector_store %arg5[%c0, %c0_0], %0 {strides = array<i32>} : memref<21x16xf32, #tpu.memory_space<vmem>>, vector<2x16xf32>,
    %c0_1 = arith.constant 0 : index
    %c0_2 = arith.constant 0 : index
    %c0_3 = arith.constant 0 : index
    %2 = vector.load %arg1[%c0_1, %c0_2, %c0_3] : memref<1x17x16xbf16, #tpu.memory_space<vmem>>, vector<1x17x16xbf16>
    %3 = vector.shape_cast %2 : vector<1x17x16xbf16> to vector<17x16xbf16>
    %4 = arith.extf %3 : vector<17x16xbf16> to vector<17x16xf32>
    %c2 = arith.constant 2 : index
    %c0_4 = arith.constant 0 : index
    %5 = vector.load %arg5[%c2, %c0_4] : memref<21x16xf32, #tpu.memory_space<vmem>>, vector<17x16xf32>
    tpu.vector_store %arg5[%c2, %c0_4], %4 {strides = array<i32>} : memref<21x16xf32, #tpu.memory_space<vmem>>, vector<17x16xf32>,
    %cst_5 = arith.constant 0.000000e+00 : f32
    %6 = vector.broadcast %cst_5 : f32 to vector<2x16xf32>
    %c19 = arith.constant 19 : index
    %c0_6 = arith.constant 0 : index
    %7 = vector.load %arg5[%c19, %c0_6] : memref<21x16xf32, #tpu.memory_space<vmem>>, vector<2x16xf32>
    tpu.vector_store %arg5[%c19, %c0_6], %6 {strides = array<i32>} : memref<21x16xf32, #tpu.memory_space<vmem>>, vector<2x16xf32>,
    %c0_7 = arith.constant 0 : index
    %c0_8 = arith.constant 0 : index
    %8 = tpu.strided_load %arg5[%c0_7, %c0_8] {strides = array<i32: 2, 1>} : memref<21x16xf32, #tpu.memory_space<vmem>>, vector<9x16xf32>
    %c1 = arith.constant 1 : index
    %c0_9 = arith.constant 0 : index
    %9 = tpu.strided_load %arg5[%c1, %c0_9] {strides = array<i32: 2, 1>} : memref<21x16xf32, #tpu.memory_space<vmem>>, vector<9x16xf32>
    %c2_10 = arith.constant 2 : index
    %c0_11 = arith.constant 0 : index
    %10 = tpu.strided_load %arg5[%c2_10, %c0_11] {strides = array<i32: 2, 1>} : memref<21x16xf32, #tpu.memory_space<vmem>>, vector<9x16xf32>
    %c3 = arith.constant 3 : index
    %c0_12 = arith.constant 0 : index
    %11 = tpu.strided_load %arg5[%c3, %c0_12] {strides = array<i32: 2, 1>} : memref<21x16xf32, #tpu.memory_space<vmem>>, vector<9x16xf32>
    %c4 = arith.constant 4 : index
    %c0_13 = arith.constant 0 : index
    %12 = tpu.strided_load %arg5[%c4, %c0_13] {strides = array<i32: 2, 1>} : memref<21x16xf32, #tpu.memory_space<vmem>>, vector<9x16xf32>
    %13 = tpu.concatenate %8, %9, %10, %11, %12 in 1 : vector<9x16xf32>, vector<9x16xf32>, vector<9x16xf32>, vector<9x16xf32>, vector<9x16xf32> -> vector<9x80xf32>
    %14 = arith.truncf %13 : vector<9x80xf32> to vector<9x80xbf16>
    %c0_14 = arith.constant 0 : index
    %c0_15 = arith.constant 0 : index
    %15 = vector.load %arg2[%c0_14, %c0_15] : memref<80x32xbf16, #tpu.memory_space<vmem>>, vector<80x32xbf16>
    %cst_16 = arith.constant dense<0.000000e+00> : vector<9x32xf32>
    %16 = tpu.matmul %14, %15, %cst_16 {dimension_numbers = #tpu.dot_dimension_numbers<[1], [0], [0], [1], [0, 0, 1, 1], [], []>} : vector<9x80xbf16>, vector<80x32xbf16>, vector<9x32xf32> -> vector<9x32xf32>
    %c0_17 = arith.constant 0 : index
    %c0_18 = arith.constant 0 : index
    %17 = vector.load %arg3[%c0_17, %c0_18] : memref<1x32xf32, #tpu.memory_space<vmem>>, vector<1x32xf32>
    %18 = vector.broadcast %17 : vector<1x32xf32> to vector<9x32xf32>
    %19 = arith.addf %16, %18 : vector<9x32xf32>
    %20 = arith.truncf %19 : vector<9x32xf32> to vector<9x32xbf16>
    %c0_19 = arith.constant 0 : index
    %c0_20 = arith.constant 0 : index
    %c0_21 = arith.constant 0 : index
    %21 = vector.load %arg4[%c0_19, %c0_20, %c0_21] : memref<1x9x32xbf16, #tpu.memory_space<vmem>>, vector<1x9x32xbf16>
    %22 = vector.shape_cast %21 : vector<1x9x32xbf16> to vector<9x32xbf16>
    %23 = vector.shape_cast %20 : vector<9x32xbf16> to vector<1x9x32xbf16>
    tpu.vector_store %arg4[%c0_19, %c0_20, %c0_21], %23 {strides = array<i32>} : memref<1x9x32xbf16, #tpu.memory_space<vmem>>, vector<1x9x32xbf16>,
    return
  }
  func.func @transform_0(%arg0: i32) -> (i32, i32, i32) {
    %c0_i32 = arith.constant 0 : i32
    %c0_i32_0 = arith.constant 0 : i32
    %c0_i32_1 = arith.constant 0 : i32
    return %arg0, %c0_i32, %c0_i32_0 : i32, i32, i32
  }
  func.func @transform_1(%arg0: i32) -> (i32, i32) {
    %c0_i32 = arith.constant 0 : i32
    %c0_i32_0 = arith.constant 0 : i32
    %c0_i32_1 = arith.constant 0 : i32
    return %c0_i32, %c0_i32_0 : i32, i32
  }
  func.func @transform_2(%arg0: i32) -> (i32, i32) {
    %c0_i32 = arith.constant 0 : i32
    %c0_i32_0 = arith.constant 0 : i32
    %c0_i32_1 = arith.constant 0 : i32
    return %c0_i32, %c0_i32_0 : i32, i32
  }
  func.func @transform_3(%arg0: i32) -> (i32, i32, i32) {
    %c0_i32 = arith.constant 0 : i32
    %c0_i32_0 = arith.constant 0 : i32
    %c0_i32_1 = arith.constant 0 : i32
    return %arg0, %c0_i32, %c0_i32_0 : i32, i32, i32
  }
}

module attributes {stable_mosaic.version = 11 : i64} {
  func.func @_resblock_kernel(%arg0: i32, %arg1: memref<1x9x32xbf16, #tpu.memory_space<vmem>>, %arg2: memref<32x32xf32, #tpu.memory_space<vmem>>, %arg3: memref<4x32xf32, #tpu.memory_space<vmem>>, %arg4: memref<2x96x32xbf16, #tpu.memory_space<vmem>>, %arg5: memref<2x32xf32, #tpu.memory_space<vmem>>, %arg6: memref<1x9x32xbf16, #tpu.memory_space<vmem>>, %arg7: memref<11x32xf32, #tpu.memory_space<vmem>>) attributes {dimension_semantics = [#tpu.dimension_semantics<parallel>], iteration_bounds = array<i64: 4>, scalar_prefetch = 0 : i64, scratch_operands = 1 : i64, tpu.core_type = #tpu.core_type<tc>, window_params = [{transform_indices = @transform_0, window_bounds = array<i64: 1, 9, 32>}, {pipeline_mode = #tpu.pipeline_mode<synchronous>, transform_indices = @transform_1, window_bounds = array<i64: 32, 32>}, {pipeline_mode = #tpu.pipeline_mode<synchronous>, transform_indices = @transform_2, window_bounds = array<i64: 4, 32>}, {pipeline_mode = #tpu.pipeline_mode<synchronous>, transform_indices = @transform_3, window_bounds = array<i64: 2, 96, 32>}, {pipeline_mode = #tpu.pipeline_mode<synchronous>, transform_indices = @transform_4, window_bounds = array<i64: 2, 32>}, {transform_indices = @transform_5, window_bounds = array<i64: 1, 9, 32>}]} {
    %c0 = arith.constant 0 : index
    %c0_0 = arith.constant 0 : index
    %0 = vector.load %arg2[%c0, %c0_0] : memref<32x32xf32, #tpu.memory_space<vmem>>, vector<32x32xf32>
    %cst = arith.constant 0.000000e+00 : f32
    %1 = vector.broadcast %cst : f32 to vector<1x32xf32>
    %c0_1 = arith.constant 0 : index
    %c0_2 = arith.constant 0 : index
    %2 = vector.load %arg7[%c0_1, %c0_2] : memref<11x32xf32, #tpu.memory_space<vmem>>, vector<1x32xf32>
    tpu.vector_store %arg7[%c0_1, %c0_2], %1 {strides = array<i32>} : memref<11x32xf32, #tpu.memory_space<vmem>>, vector<1x32xf32>,
    %cst_3 = arith.constant 0.000000e+00 : f32
    %3 = vector.broadcast %cst_3 : f32 to vector<1x32xf32>
    %c10 = arith.constant 10 : index
    %c0_4 = arith.constant 0 : index
    %4 = vector.load %arg7[%c10, %c0_4] : memref<11x32xf32, #tpu.memory_space<vmem>>, vector<1x32xf32>
    tpu.vector_store %arg7[%c10, %c0_4], %3 {strides = array<i32>} : memref<11x32xf32, #tpu.memory_space<vmem>>, vector<1x32xf32>,
    %c0_5 = arith.constant 0 : index
    %c0_6 = arith.constant 0 : index
    %c0_7 = arith.constant 0 : index
    %5 = vector.load %arg1[%c0_5, %c0_6, %c0_7] : memref<1x9x32xbf16, #tpu.memory_space<vmem>>, vector<1x9x32xbf16>
    %6 = vector.shape_cast %5 : vector<1x9x32xbf16> to vector<9x32xbf16>
    %7 = arith.extf %6 : vector<9x32xbf16> to vector<9x32xf32>
    %cst_8 = arith.constant dense<0.000000e+00> : vector<32xf32>
    %8 = vector.multi_reduction <add>, %7, %cst_8 [0] : vector<9x32xf32> to vector<32xf32>
    %9 = vector.shape_cast %8 : vector<32xf32> to vector<1x32xf32>
    %cst_9 = arith.constant dense<0.000000e+00> : vector<1x32xf32>
    %10 = tpu.matmul %9, %0, %cst_9 {dimension_numbers = #tpu.dot_dimension_numbers<[1], [0], [0], [1], [0, 0, 1, 1], [], []>} : vector<1x32xf32>, vector<32x32xf32>, vector<1x32xf32> -> vector<1x32xf32>
    %11 = vector.broadcast %10 : vector<1x32xf32> to vector<9x32xf32>
    %12 = arith.subf %7, %11 : vector<9x32xf32>
    %13 = arith.mulf %12, %12 : vector<9x32xf32>
    %cst_10 = arith.constant dense<0.000000e+00> : vector<32xf32>
    %14 = vector.multi_reduction <add>, %13, %cst_10 [0] : vector<9x32xf32> to vector<32xf32>
    %15 = vector.shape_cast %14 : vector<32xf32> to vector<1x32xf32>
    %cst_11 = arith.constant dense<0.000000e+00> : vector<1x32xf32>
    %16 = tpu.matmul %15, %0, %cst_11 {dimension_numbers = #tpu.dot_dimension_numbers<[1], [0], [0], [1], [0, 0, 1, 1], [], []>} : vector<1x32xf32>, vector<32x32xf32>, vector<1x32xf32> -> vector<1x32xf32>
    %cst_12 = arith.constant 9.99999974E-6 : f32
    %17 = vector.broadcast %cst_12 : f32 to vector<1x32xf32>
    %18 = arith.addf %16, %17 : vector<1x32xf32>
    %19 = math.rsqrt %18 : vector<1x32xf32>
    %20 = vector.broadcast %19 : vector<1x32xf32> to vector<9x32xf32>
    %21 = arith.mulf %12, %20 : vector<9x32xf32>
    %c0_13 = arith.constant 0 : index
    %c0_14 = arith.constant 0 : index
    %22 = vector.load %arg3[%c0_13, %c0_14] : memref<4x32xf32, #tpu.memory_space<vmem>>, vector<1x32xf32>
    %23 = vector.broadcast %22 : vector<1x32xf32> to vector<9x32xf32>
    %24 = arith.mulf %21, %23 : vector<9x32xf32>
    %c1 = arith.constant 1 : index
    %c0_15 = arith.constant 0 : index
    %25 = vector.load %arg3[%c1, %c0_15] : memref<4x32xf32, #tpu.memory_space<vmem>>, vector<1x32xf32>
    %26 = vector.broadcast %25 : vector<1x32xf32> to vector<9x32xf32>
    %27 = arith.addf %24, %26 : vector<9x32xf32>
    %28 = arith.negf %27 : vector<9x32xf32>
    %29 = math.exp %28 : vector<9x32xf32>
    %cst_16 = arith.constant 1.000000e+00 : f32
    %30 = vector.broadcast %cst_16 : f32 to vector<9x32xf32>
    %31 = arith.addf %30, %29 : vector<9x32xf32>
    %32 = arith.divf %30, %31 : vector<9x32xf32>
    %33 = arith.mulf %27, %32 : vector<9x32xf32>
    %c1_17 = arith.constant 1 : index
    %c0_18 = arith.constant 0 : index
    %34 = vector.load %arg7[%c1_17, %c0_18] : memref<11x32xf32, #tpu.memory_space<vmem>>, vector<9x32xf32>
    tpu.vector_store %arg7[%c1_17, %c0_18], %33 {strides = array<i32>} : memref<11x32xf32, #tpu.memory_space<vmem>>, vector<9x32xf32>,
    %c0_19 = arith.constant 0 : index
    %c0_20 = arith.constant 0 : index
    %35 = vector.load %arg7[%c0_19, %c0_20] : memref<11x32xf32, #tpu.memory_space<vmem>>, vector<9x32xf32>
    %c2 = arith.constant 2 : index
    %c0_21 = arith.constant 0 : index
    %36 = vector.load %arg7[%c2, %c0_21] : memref<11x32xf32, #tpu.memory_space<vmem>>, vector<9x32xf32>
    %37 = tpu.concatenate %35, %33, %36 in 1 : vector<9x32xf32>, vector<9x32xf32>, vector<9x32xf32> -> vector<9x96xf32>
    %38 = arith.truncf %37 : vector<9x96xf32> to vector<9x96xbf16>
    %c0_22 = arith.constant 0 : index
    %c0_23 = arith.constant 0 : index
    %c0_24 = arith.constant 0 : index
    %39 = vector.load %arg4[%c0_22, %c0_23, %c0_24] : memref<2x96x32xbf16, #tpu.memory_space<vmem>>, vector<1x96x32xbf16>
    %40 = vector.shape_cast %39 : vector<1x96x32xbf16> to vector<96x32xbf16>
    %cst_25 = arith.constant dense<0.000000e+00> : vector<9x32xf32>
    %41 = tpu.matmul %38, %40, %cst_25 {dimension_numbers = #tpu.dot_dimension_numbers<[1], [0], [0], [1], [0, 0, 1, 1], [], []>} : vector<9x96xbf16>, vector<96x32xbf16>, vector<9x32xf32> -> vector<9x32xf32>
    %c0_26 = arith.constant 0 : index
    %c0_27 = arith.constant 0 : index
    %42 = vector.load %arg5[%c0_26, %c0_27] : memref<2x32xf32, #tpu.memory_space<vmem>>, vector<1x32xf32>
    %43 = vector.broadcast %42 : vector<1x32xf32> to vector<9x32xf32>
    %44 = arith.addf %41, %43 : vector<9x32xf32>
    %cst_28 = arith.constant dense<0.000000e+00> : vector<32xf32>
    %45 = vector.multi_reduction <add>, %44, %cst_28 [0] : vector<9x32xf32> to vector<32xf32>
    %46 = vector.shape_cast %45 : vector<32xf32> to vector<1x32xf32>
    %cst_29 = arith.constant dense<0.000000e+00> : vector<1x32xf32>
    %47 = tpu.matmul %46, %0, %cst_29 {dimension_numbers = #tpu.dot_dimension_numbers<[1], [0], [0], [1], [0, 0, 1, 1], [], []>} : vector<1x32xf32>, vector<32x32xf32>, vector<1x32xf32> -> vector<1x32xf32>
    %48 = vector.broadcast %47 : vector<1x32xf32> to vector<9x32xf32>
    %49 = arith.subf %44, %48 : vector<9x32xf32>
    %50 = arith.mulf %49, %49 : vector<9x32xf32>
    %cst_30 = arith.constant dense<0.000000e+00> : vector<32xf32>
    %51 = vector.multi_reduction <add>, %50, %cst_30 [0] : vector<9x32xf32> to vector<32xf32>
    %52 = vector.shape_cast %51 : vector<32xf32> to vector<1x32xf32>
    %cst_31 = arith.constant dense<0.000000e+00> : vector<1x32xf32>
    %53 = tpu.matmul %52, %0, %cst_31 {dimension_numbers = #tpu.dot_dimension_numbers<[1], [0], [0], [1], [0, 0, 1, 1], [], []>} : vector<1x32xf32>, vector<32x32xf32>, vector<1x32xf32> -> vector<1x32xf32>
    %cst_32 = arith.constant 9.99999974E-6 : f32
    %54 = vector.broadcast %cst_32 : f32 to vector<1x32xf32>
    %55 = arith.addf %53, %54 : vector<1x32xf32>
    %56 = math.rsqrt %55 : vector<1x32xf32>
    %57 = vector.broadcast %56 : vector<1x32xf32> to vector<9x32xf32>
    %58 = arith.mulf %49, %57 : vector<9x32xf32>
    %c2_33 = arith.constant 2 : index
    %c0_34 = arith.constant 0 : index
    %59 = vector.load %arg3[%c2_33, %c0_34] : memref<4x32xf32, #tpu.memory_space<vmem>>, vector<1x32xf32>
    %60 = vector.broadcast %59 : vector<1x32xf32> to vector<9x32xf32>
    %61 = arith.mulf %58, %60 : vector<9x32xf32>
    %c3 = arith.constant 3 : index
    %c0_35 = arith.constant 0 : index
    %62 = vector.load %arg3[%c3, %c0_35] : memref<4x32xf32, #tpu.memory_space<vmem>>, vector<1x32xf32>
    %63 = vector.broadcast %62 : vector<1x32xf32> to vector<9x32xf32>
    %64 = arith.addf %61, %63 : vector<9x32xf32>
    %65 = arith.negf %64 : vector<9x32xf32>
    %66 = math.exp %65 : vector<9x32xf32>
    %cst_36 = arith.constant 1.000000e+00 : f32
    %67 = vector.broadcast %cst_36 : f32 to vector<9x32xf32>
    %68 = arith.addf %67, %66 : vector<9x32xf32>
    %69 = arith.divf %67, %68 : vector<9x32xf32>
    %70 = arith.mulf %64, %69 : vector<9x32xf32>
    %c1_37 = arith.constant 1 : index
    %c0_38 = arith.constant 0 : index
    %71 = vector.load %arg7[%c1_37, %c0_38] : memref<11x32xf32, #tpu.memory_space<vmem>>, vector<9x32xf32>
    tpu.vector_store %arg7[%c1_37, %c0_38], %70 {strides = array<i32>} : memref<11x32xf32, #tpu.memory_space<vmem>>, vector<9x32xf32>,
    %c0_39 = arith.constant 0 : index
    %c0_40 = arith.constant 0 : index
    %72 = vector.load %arg7[%c0_39, %c0_40] : memref<11x32xf32, #tpu.memory_space<vmem>>, vector<9x32xf32>
    %c2_41 = arith.constant 2 : index
    %c0_42 = arith.constant 0 : index
    %73 = vector.load %arg7[%c2_41, %c0_42] : memref<11x32xf32, #tpu.memory_space<vmem>>, vector<9x32xf32>
    %74 = tpu.concatenate %72, %70, %73 in 1 : vector<9x32xf32>, vector<9x32xf32>, vector<9x32xf32> -> vector<9x96xf32>
    %75 = arith.truncf %74 : vector<9x96xf32> to vector<9x96xbf16>
    %c1_43 = arith.constant 1 : index
    %c0_44 = arith.constant 0 : index
    %c0_45 = arith.constant 0 : index
    %76 = vector.load %arg4[%c1_43, %c0_44, %c0_45] : memref<2x96x32xbf16, #tpu.memory_space<vmem>>, vector<1x96x32xbf16>
    %77 = vector.shape_cast %76 : vector<1x96x32xbf16> to vector<96x32xbf16>
    %cst_46 = arith.constant dense<0.000000e+00> : vector<9x32xf32>
    %78 = tpu.matmul %75, %77, %cst_46 {dimension_numbers = #tpu.dot_dimension_numbers<[1], [0], [0], [1], [0, 0, 1, 1], [], []>} : vector<9x96xbf16>, vector<96x32xbf16>, vector<9x32xf32> -> vector<9x32xf32>
    %c1_47 = arith.constant 1 : index
    %c0_48 = arith.constant 0 : index
    %79 = vector.load %arg5[%c1_47, %c0_48] : memref<2x32xf32, #tpu.memory_space<vmem>>, vector<1x32xf32>
    %80 = vector.broadcast %79 : vector<1x32xf32> to vector<9x32xf32>
    %81 = arith.addf %78, %80 : vector<9x32xf32>
    %c0_49 = arith.constant 0 : index
    %c0_50 = arith.constant 0 : index
    %c0_51 = arith.constant 0 : index
    %82 = vector.load %arg1[%c0_49, %c0_50, %c0_51] : memref<1x9x32xbf16, #tpu.memory_space<vmem>>, vector<1x9x32xbf16>
    %83 = vector.shape_cast %82 : vector<1x9x32xbf16> to vector<9x32xbf16>
    %84 = arith.extf %83 : vector<9x32xbf16> to vector<9x32xf32>
    %85 = arith.addf %81, %84 : vector<9x32xf32>
    %86 = arith.truncf %85 : vector<9x32xf32> to vector<9x32xbf16>
    %c0_52 = arith.constant 0 : index
    %c0_53 = arith.constant 0 : index
    %c0_54 = arith.constant 0 : index
    %87 = vector.load %arg6[%c0_52, %c0_53, %c0_54] : memref<1x9x32xbf16, #tpu.memory_space<vmem>>, vector<1x9x32xbf16>
    %88 = vector.shape_cast %87 : vector<1x9x32xbf16> to vector<9x32xbf16>
    %89 = vector.shape_cast %86 : vector<9x32xbf16> to vector<1x9x32xbf16>
    tpu.vector_store %arg6[%c0_52, %c0_53, %c0_54], %89 {strides = array<i32>} : memref<1x9x32xbf16, #tpu.memory_space<vmem>>, vector<1x9x32xbf16>,
    return
  }
  func.func @transform_0(%arg0: i32) -> (i32, i32, i32) {
    %c0_i32 = arith.constant 0 : i32
    %c0_i32_0 = arith.constant 0 : i32
    %c0_i32_1 = arith.constant 0 : i32
    return %arg0, %c0_i32, %c0_i32_0 : i32, i32, i32
  }
  func.func @transform_1(%arg0: i32) -> (i32, i32) {
    %c0_i32 = arith.constant 0 : i32
    %c0_i32_0 = arith.constant 0 : i32
    %c0_i32_1 = arith.constant 0 : i32
    return %c0_i32, %c0_i32_0 : i32, i32
  }
  func.func @transform_2(%arg0: i32) -> (i32, i32) {
    %c0_i32 = arith.constant 0 : i32
    %c0_i32_0 = arith.constant 0 : i32
    %c0_i32_1 = arith.constant 0 : i32
    return %c0_i32, %c0_i32_0 : i32, i32
  }
  func.func @transform_3(%arg0: i32) -> (i32, i32, i32) {
    %c0_i32 = arith.constant 0 : i32
    %c0_i32_0 = arith.constant 0 : i32
    %c0_i32_1 = arith.constant 0 : i32
    %c0_i32_2 = arith.constant 0 : i32
    return %c0_i32, %c0_i32_0, %c0_i32_1 : i32, i32, i32
  }
  func.func @transform_4(%arg0: i32) -> (i32, i32) {
    %c0_i32 = arith.constant 0 : i32
    %c0_i32_0 = arith.constant 0 : i32
    %c0_i32_1 = arith.constant 0 : i32
    return %c0_i32, %c0_i32_0 : i32, i32
  }
  func.func @transform_5(%arg0: i32) -> (i32, i32, i32) {
    %c0_i32 = arith.constant 0 : i32
    %c0_i32_0 = arith.constant 0 : i32
    %c0_i32_1 = arith.constant 0 : i32
    return %arg0, %c0_i32, %c0_i32_0 : i32, i32, i32
  }
}

</mosaic_0001>

<bundles_post_ra>
// kernel: discriminator1d_fwd.3
= control target key start
LH: loop header
LB: loop body
LE: loop exit
PB: predicated region body
PF: predicated region fallthrough
CT: control target
= control target key end

     0   :  { %s554_s9 = smov 0   ;;  %s607_s0 = inlined_call_operand.vmem [shape: bf16[4,64,2], index: 0, kind: input, shape index: {}]   ;;  %s608_s1 = inlined_call_operand.vmem [shape: bf16[16,16], index: 1, kind: input, shape index: {}]   ;;  %s609_s2 = inlined_call_operand.vmem [shape: bf16[4,17,16], index: 2, kind: output, shape index: {}]  }
   0x1 LB: > { %s433_s10 = sadd.s32 4294967295, %s529_s9   ;;  %p437_p0 = scmp.ge.s32.totalorder %s529_s9, 1  ;;  %s529_s9 = sphi %s554_s9, %s12_s9  }
   0x2   : > { %p112_p1 = scmp.lt.s32.totalorder %s529_s9, 5 }
   0x4   : > { %p113_p2 = pnand %p437_p0, %p112_p1 }
   0x5   : > { %p134_p3 = scmp.lt.s32.totalorder (!%p113_p2), %s433_s10, 3  ;;  %s532_s15 = smov (!%p113_p2), 6  }
   0x6   : > { %116 = sbr.rel (%p113_p2) target bundleno = 319 (0x13f), region = 28  ;;  %s533_s16 = smov (!%p113_p2), 2  }
   0x7   : > { %s534_s17 = smov (!%p113_p2), 8   ;;  %s535_s18 = smov (!%p113_p2), 4  }
   0x8   : > { %s536_s19 = smov (!%p113_p2), 10   ;;  %s537_s20 = smov (!%p113_p2), 12  }
   0x9   : > { %s538_s21 = smov (!%p113_p2), 14  }
   0xb   : > { %vm145_vm0 = vcmask 11264   ;;  %v531_v0 = vmov 0.0   ;;  %s611_s10 = smov (!%p134_p3, %s433_s10), 3  ;;  %vm163_vm1 = vcmask 15360   ;;  %v450_v41 = vld [vmem:[%s608_s1] sm:$0xff]  ;;  %vm307_vm2 = vcmask 31744  }
   0xc   : > { %146 = vst.msk [vmem:[#allocation2] sm:$0xf] %vm145_vm0, %v531_v0  ;;  %s449_s11 = sshll.u32 %s611_s10, 5  ;;  %355 = vmatpush.bf16.msra.mxu0 %v450_v41  ;;  %470 = vmatpush.bf16.msra.mxu1 %v450_v41  ;;  %vm311_vm3 = vcmask 48128   ;;  %vm315_vm4 = vcmask 64512   ;;  %vm319_vm5 = vcmask 80896  }
   0xd   : > { %172 = vst.msk [vmem:[#allocation2 + $0x44] sm:$0xf] %vm145_vm0, %v531_v0  ;;  %s138_s14 = scalar_lea.vmem %s607_s0, %s449_s11  ;;  %vm323_vm6 = vcmask 97280   ;;  %vm327_vm7 = vcmask 113664   ;;  %vm341_vm8 = vcmask 130048   ;;  %s471_s24 = smul.u32 12, %s611_s10 }
   0xe   : > { %v452_v1 = vld [vmem:[%s138_s14] sm:$0xff]   ;;  %v467_v2 = vld [vmem:[%s138_s14 + $0x8] sm:$0xff]   ;;  %v468_v3 = vld [vmem:[%s138_s14 + $0x10] sm:$0xff]   ;;  %vm369_vm9 = vcmask 125952   ;;  %vm372_vm10 = vcmask 122880  }
   0xf   : > { %v453_v4 = vunpack.c.l.bf16 %v452_v1  ;;  %v454_v5 = vunpack.c.h.bf16 %v452_v1  ;;  %v457_v6 = vunpack.c.l.bf16 %v467_v2  ;;  %v458_v7 = vunpack.c.h.bf16 %v467_v2  ;;  %v469_v8 = vld [vmem:[%s138_s14 + $0x18] sm:$0xff]   ;;  %s143_s27 = scalar_lea.vmem %s609_s2, %s471_s24 }
  0x10   : > { %v461_v9 = vunpack.c.l.bf16 %v468_v3  ;;  %v462_v10 = vunpack.c.h.bf16 %v468_v3  ;;  %v465_v11 = vunpack.c.l.bf16 %v469_v8  ;;  %v466_v12 = vunpack.c.h.bf16 %v469_v8 }
  0x11   : > { %164 = vst.msk [vmem:[#allocation2 + $0x4] sm:$0xff] %vm163_vm1, %v453_v4  ;;  %vm373_vm11 = vsmask.f32 256 }
  0x12   : > { %165 = vst.msk [vmem:[#allocation2 + $0xc] sm:$0xff] %vm163_vm1, %v454_v5  ;;  %vm374_vm12 = vmand %vm372_vm10, %vm373_vm11 }
  0x13   : > { %166 = vst.msk [vmem:[#allocation2 + $0x14] sm:$0xff] %vm163_vm1, %v457_v6 }
  0x14   : > { %167 = vst.msk [vmem:[#allocation2 + $0x1c] sm:$0xff] %vm163_vm1, %v458_v7  ;;  %v201_v37 = vld [vmem:[#allocation2 + $0x44] ss:$4 sm:$0x1] }
  0x15   : > { %168 = vst.msk [vmem:[#allocation2 + $0x24] sm:$0xff] %vm163_vm1, %v461_v9  ;;  %v207_v38 = vld [vmem:[#allocation2 + $0x45] ss:$4 sm:$0x1] }
  0x16   : > { %169 = vst.msk [vmem:[#allocation2 + $0x2c] sm:$0xff] %vm163_vm1, %v462_v10  ;;  %v213_v39 = vld [vmem:[#allocation2 + $0x46] ss:$4 sm:$0x1] }
  0x17   : > { %170 = vst.msk [vmem:[#allocation2 + $0x34] sm:$0xff] %vm163_vm1, %v465_v11  ;;  %v219_v40 = vld [vmem:[#allocation2 + $0x47] ss:$4 sm:$0x1] }
  0x18   : > { %171 = vst.msk [vmem:[#allocation2 + $0x3c] sm:$0xff] %vm163_vm1, %v466_v12 }
  0x1b   : > { %v191_v13 = vld [vmem:[#allocation2 + $0x3] ss:$4 sm:$0xff]  ;;  %v179_v14 = vld [vmem:[#allocation2 + $0x1] ss:$4 sm:$0xff]  ;;  %v197_v17 = vld [vmem:[#allocation2 + $0x4] ss:$4 sm:$0xff] }
  0x1c   : > { %v185_v22 = vld [vmem:[#allocation2 + $0x2] ss:$4 sm:$0xff]  ;;  %v203_v27 = vld [vmem:[#allocation2 + $0x5] ss:$4 sm:$0xff]  ;;  %v215_v34 = vld [vmem:[#allocation2 + $0x7] ss:$4 sm:$0xff] }
  0x1d   : > { %v209_v29 = vld [vmem:[#allocation2 + $0x6] ss:$4 sm:$0xff]  ;;  %v173_v51 = vld [vmem:[#allocation2] ss:$4 sm:$0xff] }
  0x1f   : > { %v193_v15 = vld [vmem:[#allocation2 + $0x23] ss:$4 sm:$0xff]  ;;  %v181_v16 = vld [vmem:[#allocation2 + $0x21] ss:$4 sm:$0xff]  ;;  %v199_v20 = vld [vmem:[#allocation2 + $0x24] ss:$4 sm:$0xff] }
  0x20   : > { %v498_v18 = vpack.i.bf16 %v193_v15, %v191_v13  ;;  %v488_v19 = vpack.i.bf16 %v181_v16, %v179_v14  ;;  %v503_v21 = vpack.i.bf16 %v199_v20, %v197_v17  ;;  %v187_v23 = vld [vmem:[#allocation2 + $0x22] ss:$4 sm:$0xff]  ;;  %v183_v25 = vld [vmem:[#allocation2 + $0x41] ss:$4 sm:$0x1] }
  0x21   : > { %v493_v24 = vpack.i.bf16 %v187_v23, %v185_v22  ;;  %v189_v26 = vld [vmem:[#allocation2 + $0x42] ss:$4 sm:$0x1]  ;;  %v205_v28 = vld [vmem:[#allocation2 + $0x25] ss:$4 sm:$0xff] }
  0x22   : > { %499 = vrot.lane.b32.xlu1 %v498_v18, %s532_s15  ;;  %489 = vrot.lane.b32.xlu0 %v488_v19, %s533_s16  ;;  %v211_v30 = vld [vmem:[#allocation2 + $0x26] ss:$4 sm:$0xff]  ;;  %v508_v31 = vpack.i.bf16 %v205_v28, %v203_v27  ;;  %v195_v32 = vld [vmem:[#allocation2 + $0x43] ss:$4 sm:$0x1] }
  0x23   : > { %504 = vrot.lane.b32.xlu2 %v503_v21, %s534_s17  ;;  %v513_v33 = vpack.i.bf16 %v211_v30, %v209_v29  ;;  %v217_v35 = vld [vmem:[#allocation2 + $0x27] ss:$4 sm:$0xff]  ;;  %v175_v50 = vld [vmem:[#allocation2 + $0x20] ss:$4 sm:$0xff] }
  0x24   : > { %v518_v36 = vpack.i.bf16 %v217_v35, %v215_v34  ;;  %v177_v5 = vld [vmem:[#allocation2 + $0x40] ss:$4 sm:$0x1]  ;;  %v375_v35 = vld [vmem:[%s143_s27 + $0x8] sm:$0x1] }
  0x2a   : > { %227 = vrot.lane.b32.xlu1 %v183_v25, %s533_s16  ;;  %494 = vrot.lane.b32.xlu0 %v493_v24, %s535_s18 }
  0x2b   : > { %239 = vrot.lane.b32.xlu2 %v189_v26, %s535_s18 }
  0x32   : > { %251 = vrot.lane.b32.xlu1 %v195_v32, %s532_s15  ;;  %509 = vrot.lane.b32.xlu0 %v508_v31, %s536_s19 }
  0x33   : > { %514 = vrot.lane.b32.xlu2 %v513_v33, %s537_s20 }
  0x3a   : > { %519 = vrot.lane.b32.xlu1 %v518_v36, %s538_s21  ;;  %263 = vrot.lane.b32.xlu0 %v201_v37, %s534_s17 }
  0x3b   : > { %275 = vrot.lane.b32.xlu2 %v207_v38, %s536_s19 }
  0x42   : > { %287 = vrot.lane.b32.xlu0 %v213_v39, %s537_s20  ;;  %299 = vrot.lane.b32.xlu1 %v219_v40, %s538_s21 }
  0x7d   : > { %v505_v42 = vpop.permute.xlu2 %504 }
  0x7e   : > { %v507_v3 = vunpack.i.h.bf16 %v505_v42  ;;  %v506_v4 = vunpack.i.l.bf16 %v505_v42 }
  0x85   : > { %v240_v47 = vpop.permute.xlu2 %239 }
  0x8d   : > { %v515_v2 = vpop.permute.xlu2 %514 }
  0x8e   : > { %v517_v6 = vunpack.i.h.bf16 %v515_v2  ;;  %v516_v7 = vunpack.i.l.bf16 %v515_v2 }
  0x94   : > { %v500_v43 = vpop.permute.xlu1 %499  ;;  %v490_v44 = vpop.permute.xlu0 %489 }
  0x95   : > { %v492_v48 = vunpack.i.h.bf16 %v490_v44  ;;  %v491_v49 = vunpack.i.l.bf16 %v490_v44  ;;  %v502_v60 = vunpack.i.h.bf16 %v500_v43  ;;  %v501_v61 = vunpack.i.l.bf16 %v500_v43  ;;  %v276_v25 = vpop.permute.xlu2 %275 }
  0x97   : > { %v305_v54 = vsel %vm163_vm1, %v175_v50, %v492_v48  ;;  %v304_v55 = vsel %vm163_vm1, %v173_v51, %v491_v49 }
  0x9c   : > { %v228_v45 = vpop.permute.xlu1 %227  ;;  %v495_v46 = vpop.permute.xlu0 %494 }
  0x9d   : > { %v497_v52 = vunpack.i.h.bf16 %v495_v46  ;;  %v496_v53 = vunpack.i.l.bf16 %v495_v46  ;;  %v306_v12 = vsel %vm163_vm1, %v177_v5, %v228_v45 }
  0x9e   : > { %v310_v19 = vsel %vm307_vm2, %v306_v12, %v240_v47 }
  0x9f   : > { %v308_v56 = vsel %vm307_vm2, %v304_v55, %v496_v53  ;;  %v309_v57 = vsel %vm307_vm2, %v305_v54, %v497_v52 }
  0xa0   : > { %v312_v62 = vsel %vm311_vm3, %v308_v56, %v501_v61  ;;  %v313_v63 = vsel %vm311_vm3, %v309_v57, %v502_v60 }
  0xa1   : > { %v316_v8 = vsel %vm315_vm4, %v312_v62, %v506_v4  ;;  %v317_v9 = vsel %vm315_vm4, %v313_v63, %v507_v3 }
  0xa4   : > { %v252_v58 = vpop.permute.xlu1 %251  ;;  %v510_v59 = vpop.permute.xlu0 %509 }
  0xa5   : > { %v512_v0 = vunpack.i.h.bf16 %v510_v59  ;;  %v511_v1 = vunpack.i.l.bf16 %v510_v59  ;;  %v314_v22 = vsel %vm311_vm3, %v310_v19, %v252_v58 }
  0xa7   : > { %v320_v10 = vsel %vm319_vm5, %v316_v8, %v511_v1  ;;  %v321_v11 = vsel %vm319_vm5, %v317_v9, %v512_v0 }
  0xa8   : > { %v324_v17 = vsel %vm323_vm6, %v320_v10, %v516_v7  ;;  %v325_v18 = vsel %vm323_vm6, %v321_v11, %v517_v6 }
  0xac   : > { %v520_v13 = vpop.permute.xlu1 %519  ;;  %v264_v14 = vpop.permute.xlu0 %263 }
  0xad   : > { %v522_v15 = vunpack.i.h.bf16 %v520_v13  ;;  %v521_v16 = vunpack.i.l.bf16 %v520_v13  ;;  %v318_v24 = vsel %vm315_vm4, %v314_v22, %v264_v14 }
  0xae   : > { %v322_v26 = vsel %vm319_vm5, %v318_v24, %v276_v25 }
  0xaf   : > { %v328_v20 = vsel %vm327_vm7, %v324_v17, %v521_v16  ;;  %v329_v21 = vsel %vm327_vm7, %v325_v18, %v522_v15 }
  0xb0   : > { %v331_v23 = vpack.c.bf16 %v329_v21, %v328_v20 }
  0xb2   : > { %445 = vmatmul.msk.bf16.vlgmr.msra.gmra.mxu0 %vm341_vm8, %v331_v23 }
  0xb4   : > { %v288_v27 = vpop.permute.xlu0 %287  ;;  %v300_v28 = vpop.permute.xlu1 %299 }
  0xb5   : > { %v326_v29 = vsel %vm323_vm6, %v322_v26, %v288_v27 }
  0xb6   : > { %v330_v30 = vsel %vm327_vm7, %v326_v29, %v300_v28 }
  0xb7   : > { %v332_v31 = vpack.c.bf16 %v330_v30, %v330_v30 }
  0xb9   : > { %446 = vmatmul.msk.bf16.vlgmr.msra.gmra.mxu1 %vm341_vm8, %v332_v31 }
 0x12f   : > { %v357_v32 = vpop.f32.mrf.mxu0 }
 0x130   : > { %v366_v33 = vpack.c.bf16 %v357_v32, %v357_v32 }
 0x132   : > { %370 = vst.msk [vmem:[%s143_s27] sm:$0xf] %vm369_vm9, %v366_v33 }
 0x136   : > { %v362_v34 = vpop.f32.mrf.mxu1 }
 0x137   : > { %v368_v36 = vpack.c.bf16 %v362_v34, %v362_v34  ;;  %v359_v37 = vpop.f32.mrf.mxu0 }
 0x138   : > { %v367_v38 = vpack.c.bf16 %v359_v37, %v359_v37 }
 0x139   : > { %v376_v39 = vsel %vm374_vm12, %v368_v36, %v375_v35 }
 0x13a   : > { %377 = vst [vmem:[%s143_s27 + $0x8] sm:$0x1] %v376_v39 }
 0x13b   : > { %371 = vst.msk [vmem:[%s143_s27 + $0x4] sm:$0xf] %vm369_vm9, %v367_v38 }
 0x13e   : > { %v364_v40 = vpop.f32.mrf.mxu1 }
 0x13f PF: > { %s12_s9 = sadd.s32 1, %s529_s9  }
 0x140   : > { %p9_p4 = scmp.ge.s32.totalorder %s12_s9, 6  }
 0x142   :  { %11 = sbr.rel (!%p9_p4) target bundleno = 1 (0x1), region = 81 }

// kernel: discriminator1d_fwd.4
= control target key start
LH: loop header
LB: loop body
LE: loop exit
PB: predicated region body
PF: predicated region fallthrough
CT: control target
= control target key end

     0   :  { %s485_s12 = smov 0   ;;  %s528_s0 = inlined_call_operand.vmem [shape: bf16[4,17,16], index: 0, kind: input, shape index: {}]   ;;  %s529_s1 = inlined_call_operand.vmem [shape: bf16[80,32], index: 1, kind: input, shape index: {}]   ;;  %s530_s2 = inlined_call_operand.vmem [shape: f32[1,32], index: 2, kind: input, shape index: {}]   ;;  %s531_s3 = inlined_call_operand.vmem [shape: bf16[4,9,32], index: 3, kind: output, shape index: {}]  }
   0x1 LB: > { %s376_s13 = sadd.s32 4294967295, %s458_s12   ;;  %p380_p0 = scmp.ge.s32.totalorder %s458_s12, 1  ;;  %s458_s12 = sphi %s485_s12, %s13_s12  }
   0x2   : > { %p137_p1 = scmp.lt.s32.totalorder %s458_s12, 5 }
   0x4   : > { %p138_p2 = pnand %p380_p0, %p137_p1 }
   0x5   : > { %p161_p3 = scmp.lt.s32.totalorder (!%p138_p2), %s376_s13, 3  ;;  %s461_s20 = smov (!%p138_p2), 16  }
   0x6   : > { %141 = sbr.rel (%p138_p2) target bundleno = 299 (0x12b), region = 32  ;;  %s462_s21 = smov (!%p138_p2), 48  }
   0x7   : > { %s463_s22 = smov (!%p138_p2), 32   ;;  %s464_s23 = smov (!%p138_p2), 64  }
   0xb   : > { %vm172_vm0 = vcmask 123904   ;;  %v460_v0 = vmov 0.0   ;;  %v412_v1 = vld [vmem:[%s529_s1 + $0x20] sm:$0xff]  ;;  %s533_s13 = smov (!%p161_p3, %s376_s13), 3  ;;  %vm180_vm1 = vcmask 130048   ;;  %vm183_vm2 = vcmask 122880  }
   0xc   : > { %173 = vst.msk [vmem:[#allocation2] sm:$0x3] %vm172_vm0, %v460_v0  ;;  %300 = vmatpush.bf16.msra.mxu0 %v412_v1  ;;  %s417_s16 = smul.u32 12, %s533_s13  ;;  %v411_v19 = vld [vmem:[%s529_s1 + $0x18] sm:$0xff]  ;;  %v410_v20 = vld [vmem:[%s529_s1 + $0x10] sm:$0xff]  ;;  %v409_v21 = vld [vmem:[%s529_s1 + $0x8] sm:$0xff] }
   0xd   : > { %185 = vst.msk [vmem:[#allocation2 + $0x13] sm:$0x3] %vm172_vm0, %v460_v0  ;;  %v408_v22 = vld [vmem:[%s529_s1] sm:$0xff]  ;;  %vm239_vm3 = vcmask 261120   ;;  %vm242_vm4 = vcmask 392192   ;;  %vm245_vm5 = vcmask 523264  }
   0xe   : > { %s165_s19 = scalar_lea.vmem %s528_s0, %s417_s16  ;;  %vm293_vm6 = vcmask 654336   ;;  %v451_v46 = vld [vmem:[%s530_s2] ss:$0 sm:$0xff]  ;;  %s407_s7 = sshll.u32 %s533_s13, 3  ;;  %vm313_vm7 = vcmask 257024   ;;  %vm315_vm8 = vcmask 253952  }
   0xf   : > { %v414_v2 = vld [vmem:[%s165_s19] sm:$0xff]   ;;  %v176_v3 = vld [vmem:[%s165_s19 + $0x8] sm:$0x1]  ;;  %s170_s10 = scalar_lea.vmem %s531_s3, %s407_s7  ;;  %vm316_vm9 = vsmask.f32 256 }
  0x10   : > { %v415_v4 = vunpack.c.l.bf16 %v414_v2  ;;  %v416_v5 = vunpack.c.h.bf16 %v414_v2  ;;  %v179_v6 = vunpack.c.l.bf16 %v176_v3  ;;  %301 = vmatpush.bf16.msra.mxu0 %v411_v19  ;;  %vm317_vm10 = vmand %vm315_vm8, %vm316_vm9  ;;  %v318_v52 = vld [vmem:[%s170_s10 + $0x4] sm:$0x1] }
  0x12   : > { %181 = vst.msk [vmem:[#allocation2 + $0x2] sm:$0xff] %vm180_vm1, %v415_v4 }
  0x13   : > { %182 = vst.msk [vmem:[#allocation2 + $0xa] sm:$0xff] %vm180_vm1, %v416_v5 }
  0x14   : > { %184 = vst.msk [vmem:[#allocation2 + $0x12] sm:$0x1] %vm183_vm2, %v179_v6  ;;  %v200_v7 = vld [vmem:[#allocation2 + $0x13] ss:$2 sm:$0x1]  ;;  %302 = vmatpush.bf16.msra.mxu0 %v410_v20 }
  0x15   : > { %v204_v16 = vld [vmem:[#allocation2 + $0x14] ss:$2 sm:$0x1] }
  0x18   : > { %303 = vmatpush.bf16.msra.mxu0 %v409_v21 }
  0x1a   : > { %v190_v8 = vld [vmem:[#allocation2 + $0x1] ss:$2 sm:$0xff]  ;;  %v192_v9 = vld [vmem:[#allocation2 + $0x11] ss:$2 sm:$0x1] }
  0x1b   : > { %v431_v10 = vpack.i.bf16 %v192_v9, %v190_v8  ;;  %v198_v11 = vld [vmem:[#allocation2 + $0x3] ss:$2 sm:$0xff]  ;;  %v194_v13 = vld [vmem:[#allocation2 + $0x2] ss:$2 sm:$0xff] }
  0x1c   : > { %v441_v12 = vpack.i.bf16 %v200_v7, %v198_v11  ;;  %v196_v14 = vld [vmem:[#allocation2 + $0x12] ss:$2 sm:$0x1]  ;;  %304 = vmatpush.bf16.msra.mxu0 %v408_v22  ;;  %v188_v27 = vld [vmem:[#allocation2 + $0x10] ss:$2 sm:$0x1] }
  0x1d   : > { %432 = vrot.lane.b32.xlu0 %v431_v10, %s461_s20  ;;  %v202_v15 = vld [vmem:[#allocation2 + $0x4] ss:$2 sm:$0xff]  ;;  %v436_v17 = vpack.i.bf16 %v196_v14, %v194_v13 }
  0x1e   : > { %442 = vrot.lane.b32.xlu1 %v441_v12, %s462_s21  ;;  %v446_v18 = vpack.i.bf16 %v204_v16, %v202_v15  ;;  %v186_v28 = vld [vmem:[#allocation2] ss:$2 sm:$0xff] }
  0x25   : > { %437 = vrot.lane.b32.xlu0 %v436_v17, %s463_s22 }
  0x26   : > { %447 = vrot.lane.b32.xlu1 %v446_v18, %s464_s23 }
  0x8f   : > { %v433_v23 = vpop.permute.xlu0 %432 }
  0x90   : > { %v443_v24 = vpop.permute.xlu1 %442  ;;  %v435_v25 = vunpack.i.h.bf16 %v433_v23  ;;  %v434_v26 = vunpack.i.l.bf16 %v433_v23 }
  0x91   : > { %v445_v30 = vunpack.i.h.bf16 %v443_v24  ;;  %v444_v31 = vunpack.i.l.bf16 %v443_v24 }
  0x92   : > { %v238_v35 = vsel %vm180_vm1, %v188_v27, %v435_v25  ;;  %v237_v36 = vsel %vm180_vm1, %v186_v28, %v434_v26 }
  0x97   : > { %v438_v29 = vpop.permute.xlu0 %437 }
  0x98   : > { %v440_v32 = vunpack.i.h.bf16 %v438_v29  ;;  %v439_v33 = vunpack.i.l.bf16 %v438_v29  ;;  %v448_v34 = vpop.permute.xlu1 %447 }
  0x99   : > { %v450_v37 = vunpack.i.h.bf16 %v448_v34  ;;  %v449_v38 = vunpack.i.l.bf16 %v448_v34 }
  0x9a   : > { %v240_v39 = vsel %vm239_vm3, %v237_v36, %v439_v33  ;;  %v241_v40 = vsel %vm239_vm3, %v238_v35, %v440_v32 }
  0x9b   : > { %v243_v41 = vsel %vm242_vm4, %v240_v39, %v444_v31  ;;  %v244_v42 = vsel %vm242_vm4, %v241_v40, %v445_v30 }
  0x9c   : > { %v246_v43 = vsel %vm245_vm5, %v243_v41, %v449_v38  ;;  %v247_v44 = vsel %vm245_vm5, %v244_v42, %v450_v37 }
  0x9d   : > { %v248_v45 = vpack.c.bf16 %v247_v44, %v246_v43 }
  0x9f   : > { %404 = vmatmul.msk.bf16.vlgmr.msra.gmra.mxu0 %vm293_vm6, %v248_v45 }
 0x11c   : > { %v306_v47 = vpop.f32.mrf.mxu0 }
 0x11d   : > { %v307_v48 = vadd.f32 %v451_v46, %v306_v47 }
 0x11f   : > { %v311_v49 = vpack.c.bf16 %v307_v48, %v307_v48 }
 0x121   : > { %314 = vst.msk [vmem:[%s170_s10] sm:$0xf] %vm313_vm7, %v311_v49 }
 0x124   : > { %v308_v50 = vpop.f32.mrf.mxu0 }
 0x125   : > { %v309_v51 = vadd.f32 %v451_v46, %v308_v50 }
 0x127   : > { %v312_v53 = vpack.c.bf16 %v309_v51, %v309_v51 }
 0x129   : > { %v319_v54 = vsel %vm317_vm10, %v312_v53, %v318_v52 }
 0x12a   : > { %320 = vst [vmem:[%s170_s10 + $0x4] sm:$0x1] %v319_v54 }
 0x12b PF: > { %s13_s12 = sadd.s32 1, %s458_s12  }
 0x12c   : > { %p10_p4 = scmp.ge.s32.totalorder %s13_s12, 6  }
 0x12e   :  { %12 = sbr.rel (!%p10_p4) target bundleno = 1 (0x1), region = 71 }

// kernel: discriminator1d_fwd.5
= control target key start
LH: loop header
LB: loop body
LE: loop exit
PB: predicated region body
PF: predicated region fallthrough
CT: control target
= control target key end

     0   :  { %s953_s18 = smov 0   ;;  %s1082_s0 = inlined_call_operand.vmem [shape: bf16[4,9,32], index: 0, kind: input, shape index: {}]   ;;  %s1083_s1 = inlined_call_operand.vmem [shape: f32[32,32], index: 1, kind: input, shape index: {}]   ;;  %s1084_s2 = inlined_call_operand.vmem [shape: f32[4,32], index: 2, kind: input, shape index: {}]   ;;  %s1085_s3 = inlined_call_operand.vmem [shape: bf16[2,96,32], index: 3, kind: input, shape index: {}]   ;;  %s1086_s4 = inlined_call_operand.vmem [shape: f32[2,32], index: 4, kind: input, shape index: {}]   ;;  %s1087_s5 = inlined_call_operand.vmem [shape: bf16[4,9,32], index: 5, kind: output, shape index: {}]  }
   0x1 LB: > { %s760_s19 = sadd.s32 4294967295, %s918_s18   ;;  %p764_p0 = scmp.ge.s32.totalorder %s918_s18, 1  ;;  %s918_s18 = sphi %s953_s18, %s15_s18  }
   0x2   : > { %p187_p1 = scmp.lt.s32.totalorder %s918_s18, 5 }
   0x4   : > { %p188_p2 = pnand %p764_p0, %p187_p1 }
   0x5   : > { %p215_p3 = scmp.lt.s32.totalorder (!%p188_p2), %s760_s19, 3  ;;  %s921_s17 = smov (!%p188_p2), 32  }
   0x6   : > { %191 = sbr.rel (%p188_p2) target bundleno = 1267 (0x4f3), region = 40  ;;  %s922_s20 = smov (!%p188_p2), 64  }
   0xb   : > { %v229_v0 = vld [vmem:[%s1083_s1 + $0x18] sm:$0xff]  ;;  %v228_v1 = vld [vmem:[%s1083_s1 + $0x10] sm:$0xff]  ;;  %v227_v2 = vld [vmem:[%s1083_s1 + $0x8] sm:$0xff]  ;;  %s1089_s19 = smov (!%p215_p3, %s760_s19), 3  ;;  %vm230_vm0 = vcmask 253952   ;;  %vm237_vm1 = vcmask 261120  }
   0xc   : > { %262 = vmatpush.msra.mxu0 %v229_v0  ;;  %299 = vmatpush.msra.mxu3 %v229_v0  ;;  %v226_v3 = vld [vmem:[%s1083_s1] sm:$0xff]  ;;  %s841_s28 = sshll.u32 %s1089_s19, 3  ;;  %v920_v50 = vmov 0.0   ;;  %v848_v56 = vld [vmem:[%s1085_s3 + $0x28] sm:$0xff]  ;;  %v846_v59 = vld [vmem:[%s1085_s3 + $0x18] sm:$0xff]  ;;  %vm392_vm13 = vcmask 523264  }
   0xd   : > { %s981_s6 = scalar_lea.vmem %s1082_s0, %s841_s28  ;;  %v886_v42 = vld [vmem:[%s1084_s2] ss:$0 sm:$0xff]  ;;  %v887_v45 = vld [vmem:[%s1084_s2 + $0x1] ss:$0 sm:$0xff]  ;;  %231 = vst.msk [vmem:[#allocation2] sm:$0x1] %vm230_vm0, %v920_v50  ;;  %452 = vmatpush.bf16.msra.mxu2 %v848_v56  ;;  %s224_s29 = scalar_lea.vmem %s1087_s5, %s841_s28 }
   0xe   : > { %263 = vmatpush.msra.mxu0 %v228_v1  ;;  %300 = vmatpush.msra.mxu3 %v228_v1  ;;  %v233_v4 = vld [vmem:[%s981_s6] sm:$0xf]  ;;  %v234_v5 = vld [vmem:[%s981_s6 + $0x4] sm:$0x1]  ;;  %232 = vst.msk [vmem:[#allocation2 + $0xa] sm:$0x1] %vm230_vm0, %v920_v50 }
   0xf   : > { %v235_v6 = vunpack.c.l.bf16 %v233_v4  ;;  %v236_v7 = vunpack.c.l.bf16 %v234_v5  ;;  %v847_v58 = vld [vmem:[%s1085_s3 + $0x20] sm:$0xff]  ;;  %vm446_vm14 = vcmask 785408  }
  0x10   : > { %264 = vmatpush.msra.mxu0 %v227_v2  ;;  %301 = vmatpush.msra.mxu3 %v227_v2 }
  0x11   : > { %v238_v8 = vsel %vm237_vm1, %v235_v6, 0.0  ;;  %v239_v9 = vsel %vm230_vm0, %v236_v7, 0.0  ;;  %453 = vmatpush.bf16.msra.mxu2 %v847_v58 }
  0x12   : > { %265 = vmatpush.msra.mxu0 %v226_v3  ;;  %302 = vmatpush.msra.mxu3 %v226_v3  ;;  %v240_v10 = vadd.f32 %v239_v9, %v238_v8 }
  0x14   : > { %488 = vmatpush.msrb.mxu3 %v229_v0  ;;  %525 = vmatpush.msrb.mxu0 %v229_v0  ;;  %v241_v11 = vrot.slane %v240_v10, 4 }
  0x15   : > { %454 = vmatpush.bf16.msra.mxu2 %v846_v59 }
  0x16   : > { %489 = vmatpush.msrb.mxu3 %v228_v1  ;;  %526 = vmatpush.msrb.mxu0 %v228_v1  ;;  %v242_v12 = vadd.f32 %v241_v11, %v240_v10 }
  0x18   : > { %490 = vmatpush.msrb.mxu3 %v227_v2  ;;  %527 = vmatpush.msrb.mxu0 %v227_v2  ;;  %v243_v13 = vrot.slane %v242_v12, 2 }
  0x1a   : > { %491 = vmatpush.msrb.mxu3 %v226_v3  ;;  %528 = vmatpush.msrb.mxu0 %v226_v3  ;;  %v244_v14 = vadd.f32 %v243_v13, %v242_v12 }
  0x1c   : > { %v245_v15 = vrot.slane %v244_v14, 1 }
  0x1e   : > { %v246_v16 = vadd.f32 %v245_v15, %v244_v14 }
  0x20   : > { %769 = vmatmul.msk.f32.vlgmr.msra.gmra.mxu0 %vm237_vm1, %v246_v16 }
  0x9d   : > { %v267_v17 = vpop.f32.mrf.mxu0 }
  0x9e   : > { %v270_v18 = vperm.slane %v267_v17, 0 }
  0xa0   : > { %v271_v19 = vsub.f32 %v235_v6, %v270_v18  ;;  %v272_v20 = vsub.f32 %v236_v7, %v270_v18 }
  0xa2   : > { %v273_v21 = vmul.f32 %v271_v19, %v271_v19  ;;  %v274_v22 = vmul.f32 %v272_v20, %v272_v20 }
  0xa4   : > { %v275_v23 = vsel %vm237_vm1, %v273_v21, 0.0  ;;  %v276_v24 = vsel %vm230_vm0, %v274_v22, 0.0  ;;  %v845_v22 = vld [vmem:[%s1085_s3 + $0x10] sm:$0xff] }
  0xa5   : > { %v277_v25 = vadd.f32 %v276_v24, %v275_v23  ;;  %455 = vmatpush.bf16.msra.mxu2 %v845_v22  ;;  %v844_v23 = vld [vmem:[%s1085_s3 + $0x8] sm:$0xff]  ;;  %v843_v24 = vld [vmem:[%s1085_s3] sm:$0xff] }
  0xa7   : > { %v278_v26 = vrot.slane %v277_v25, 4 }
  0xa9   : > { %v279_v27 = vadd.f32 %v278_v26, %v277_v25  ;;  %456 = vmatpush.bf16.msra.mxu2 %v844_v23 }
  0xab   : > { %v280_v28 = vrot.slane %v279_v27, 2 }
  0xad   : > { %v281_v29 = vadd.f32 %v280_v28, %v279_v27  ;;  %457 = vmatpush.bf16.msra.mxu2 %v843_v24 }
  0xaf   : > { %v282_v30 = vrot.slane %v281_v29, 1 }
  0xb1   : > { %v283_v31 = vadd.f32 %v282_v30, %v281_v29 }
  0xb3   : > { %770 = vmatmul.msk.f32.vlgmr.msra.gmra.mxu3 %vm237_vm1, %v283_v31 }
 0x136   : > { %v304_v32 = vpop.f32.mrf.mxu3 }
 0x137   : > { %v305_v33 = vadd.f32 1e-05, %v304_v32 }
 0x139   : > { %892 = vrsqrt.f32 %v305_v33  ;;  %vm313_vm3 = vweird.f32 %v305_v33 }
 0x13f   : > { %v893_v34 = vpop.eup %892 }
 0x140   : > { %v308_v35 = vmul.f32 %v893_v34, %v305_v33  ;;  %vm314_vm2 = vweird.f32 %v893_v34 }
 0x141   : > { %vm315_vm4 = vmor %vm313_vm3, %vm314_vm2 }
 0x142   : > { %v309_v36 = vmul.f32 %v893_v34, %v308_v35 }
 0x144   : > { %v310_v37 = vmul.f32 0.5, %v309_v36 }
 0x146   : > { %v311_v38 = vsub.f32 1.5, %v310_v37 }
 0x148   : > { %v312_v39 = vmul.f32 %v893_v34, %v311_v38 }
 0x14a   : > { %v316_v40 = vsel %vm315_vm4, %v893_v34, %v312_v39  ;;  %v888_v39 = vld [vmem:[%s1086_s4] ss:$0 sm:$0xff] }
 0x14b   : > { %v317_v41 = vperm.slane %v316_v40, 0 }
 0x14d   : > { %v318_v43 = vmul.f32 %v317_v41, %v271_v19  ;;  %v319_v44 = vmul.f32 %v317_v41, %v272_v20  ;;  %v373_v19 = vld [vmem:[#allocation2 + $0xa] sm:$0x1] }
 0x14f   : > { %v322_v46 = vmul.f32 %v886_v42, %v318_v43  ;;  %v323_v47 = vmul.f32 %v886_v42, %v319_v44 }
 0x151   : > { %v326_v48 = vadd.f32 %v887_v45, %v322_v46  ;;  %v327_v49 = vadd.f32 %v887_v45, %v323_v47 }
 0x153   : > { %v771_v51 = vmul.f32 -1.442695, %v326_v48  ;;  %v772_v52 = vmul.f32 -1.442695, %v327_v49 }
 0x155   : > { %894 = vpow2.f32 %v771_v51 }
 0x156   : > { %896 = vpow2.f32 %v772_v52 }
 0x15b   : > { %v895_v53 = vpop.eup %894 }
 0x15c   : > { %v897_v54 = vpop.eup %896  ;;  %v334_v55 = vadd.f32 1.0, %v895_v53 }
 0x15d   : > { %v335_v57 = vadd.f32 1.0, %v897_v54 }
 0x15e   : > { %898 = vrcp.f32 %v334_v55  ;;  %v347_v1 = vand.u32 2147483648, %v334_v55  ;;  %v345_v4 = vand.u32 2147483647, %v334_v55  ;;  %vm341_vm7 = vweird.f32 %v334_v55 }
 0x15f   : > { %900 = vrcp.f32 %v335_v57  ;;  %v362_v5 = vand.u32 2147483648, %v335_v57  ;;  %v360_v7 = vand.u32 2147483647, %v335_v57  ;;  %vm356_vm9 = vweird.f32 %v335_v57 }
 0x160   : > { %v348_v9 = vor.u32 1.1754944e-38, %v347_v1  ;;  %vm346_vm10 = vcmp.eq.f32.partialorder %v345_v4, 8.507059e+37 }
 0x161   : > { %v363_v12 = vor.u32 1.1754944e-38, %v362_v5  ;;  %vm361_vm12 = vcmp.eq.f32.partialorder %v360_v7, 8.507059e+37 }
 0x164   : > { %v899_v60 = vpop.eup %898 }
 0x165   : > { %v901_v61 = vpop.eup %900  ;;  %v337_v62 = vmul.f32 %v899_v60, %v334_v55  ;;  %vm342_vm5 = vweird.f32 %v899_v60 }
 0x166   : > { %v352_v63 = vmul.f32 %v901_v61, %v335_v57  ;;  %vm357_vm6 = vweird.f32 %v901_v61  ;;  %vm343_vm8 = vmor %vm341_vm7, %vm342_vm5 }
 0x167   : > { %v338_v0 = vsub.f32 1.0, %v337_v62  ;;  %vm358_vm11 = vmor %vm356_vm9, %vm357_vm6 }
 0x168   : > { %v353_v2 = vsub.f32 1.0, %v352_v63 }
 0x169   : > { %v339_v3 = vmul.f32 %v899_v60, %v338_v0 }
 0x16a   : > { %v354_v6 = vmul.f32 %v901_v61, %v353_v2 }
 0x16b   : > { %v340_v8 = vadd.f32 %v899_v60, %v339_v3 }
 0x16c   : > { %v355_v10 = vadd.f32 %v901_v61, %v354_v6 }
 0x16d   : > { %v344_v11 = vsel %vm343_vm8, %v899_v60, %v340_v8 }
 0x16e   : > { %v349_v13 = vsel %vm346_vm10, %v348_v9, %v344_v11  ;;  %v359_v14 = vsel %vm358_vm11, %v901_v61, %v355_v10 }
 0x16f   : > { %v364_v15 = vsel %vm361_vm12, %v363_v12, %v359_v14  ;;  %v366_v16 = vmul.f32 %v349_v13, %v326_v48  ;;  %v889_v13 = vld [vmem:[%s1084_s2 + $0x2] ss:$0 sm:$0xff]  ;;  %vm700_vm12 = vsmask.f32 256 }
 0x170   : > { %v367_v17 = vmul.f32 %v364_v15, %v327_v49 }
 0x171   : > { %368 = vst.msk [vmem:[#allocation2 + $0x1] sm:$0xff] %vm237_vm1, %v366_v16 }
 0x172   : > { %369 = vst.msk [vmem:[#allocation2 + $0x9] sm:$0x1] %vm230_vm0, %v367_v17  ;;  %v866_v18 = vpack.i.bf16 %v367_v17, %v366_v16  ;;  %v890_v16 = vld [vmem:[%s1084_s2 + $0x3] ss:$0 sm:$0xff] }
 0x174   : > { %867 = vrot.lane.b32.xlu0 %v866_v18, %s921_s17 }
 0x178   : > { %v370_v29 = vld [vmem:[#allocation2] sm:$0xff]  ;;  %v371_v30 = vld [vmem:[#allocation2 + $0x8] sm:$0x1] }
 0x179   : > { %v372_v20 = vld [vmem:[#allocation2 + $0x2] sm:$0xff] }
 0x17a   : > { %v871_v21 = vpack.i.bf16 %v373_v19, %v372_v20 }
 0x17c   : > { %872 = vrot.lane.b32.xlu0 %v871_v21, %s922_s20 }
 0x1e6   : > { %v868_v25 = vpop.permute.xlu0 %867 }
 0x1e7   : > { %v870_v26 = vunpack.i.h.bf16 %v868_v25  ;;  %v869_v27 = vunpack.i.l.bf16 %v868_v25 }
 0x1e9   : > { %v390_v33 = vsel %vm237_vm1, %v370_v29, %v869_v27  ;;  %v391_v34 = vsel %vm237_vm1, %v371_v30, %v870_v26  ;;  %v854_v26 = vld [vmem:[%s1085_s3 + $0x58] sm:$0xff]  ;;  %v852_v29 = vld [vmem:[%s1085_s3 + $0x48] sm:$0xff] }
 0x1ea   : > { %677 = vmatpush.bf16.msra.mxu1 %v854_v26 }
 0x1ee   : > { %v873_v28 = vpop.permute.xlu0 %872 }
 0x1ef   : > { %v875_v31 = vunpack.i.h.bf16 %v873_v28  ;;  %v874_v32 = vunpack.i.l.bf16 %v873_v28  ;;  %v853_v28 = vld [vmem:[%s1085_s3 + $0x50] sm:$0xff] }
 0x1f0   : > { %678 = vmatpush.bf16.msra.mxu1 %v853_v28 }
 0x1f1   : > { %v393_v35 = vsel %vm392_vm13, %v390_v33, %v874_v32  ;;  %v394_v36 = vsel %vm392_vm13, %v391_v34, %v875_v31 }
 0x1f2   : > { %v395_v37 = vpack.c.bf16 %v394_v36, %v393_v35 }
 0x1f4   : > { %797 = vmatmul.msk.bf16.vlgmr.msra.gmra.mxu2 %vm446_vm14, %v395_v37  ;;  %679 = vmatpush.bf16.msra.mxu1 %v852_v29 }
 0x277   : > { %v459_v38 = vpop.f32.mrf.mxu2 }
 0x278   : > { %v460_v40 = vadd.f32 %v888_v39, %v459_v38 }
 0x27a   : > { %v464_v43 = vsel %vm237_vm1, %v460_v40, 0.0 }
 0x27f   : > { %v461_v41 = vpop.f32.mrf.mxu2 }
 0x280   : > { %v462_v42 = vadd.f32 %v888_v39, %v461_v41 }
 0x282   : > { %v465_v44 = vsel %vm230_vm0, %v462_v42, 0.0 }
 0x283   : > { %v466_v45 = vadd.f32 %v465_v44, %v464_v43 }
 0x285   : > { %v467_v46 = vrot.slane %v466_v45, 4 }
 0x287   : > { %v468_v47 = vadd.f32 %v467_v46, %v466_v45 }
 0x289   : > { %v469_v48 = vrot.slane %v468_v47, 2 }
 0x28b   : > { %v470_v49 = vadd.f32 %v469_v48, %v468_v47 }
 0x28d   : > { %v471_v50 = vrot.slane %v470_v49, 1 }
 0x28f   : > { %v472_v51 = vadd.f32 %v471_v50, %v470_v49 }
 0x291   : > { %798 = vmatmul.msk.f32.vlgmr.msrb.gmra.mxu3 %vm237_vm1, %v472_v51 }
 0x314   : > { %v493_v52 = vpop.f32.mrf.mxu3 }
 0x315   : > { %v496_v53 = vperm.slane %v493_v52, 0 }
 0x317   : > { %v497_v54 = vsub.f32 %v460_v40, %v496_v53  ;;  %v498_v55 = vsub.f32 %v462_v42, %v496_v53  ;;  %v599_v53 = vld [vmem:[#allocation2 + $0xa] sm:$0x1] }
 0x319   : > { %v499_v56 = vmul.f32 %v497_v54, %v497_v54  ;;  %v500_v57 = vmul.f32 %v498_v55, %v498_v55 }
 0x31b   : > { %v501_v58 = vsel %vm237_vm1, %v499_v56, 0.0  ;;  %v502_v59 = vsel %vm230_vm0, %v500_v57, 0.0  ;;  %v851_v56 = vld [vmem:[%s1085_s3 + $0x40] sm:$0xff]  ;;  %v850_v57 = vld [vmem:[%s1085_s3 + $0x38] sm:$0xff] }
 0x31c   : > { %v503_v60 = vadd.f32 %v502_v59, %v501_v58  ;;  %680 = vmatpush.bf16.msra.mxu1 %v851_v56  ;;  %v849_v58 = vld [vmem:[%s1085_s3 + $0x30] sm:$0xff] }
 0x31e   : > { %v504_v61 = vrot.slane %v503_v60, 4 }
 0x320   : > { %v505_v62 = vadd.f32 %v504_v61, %v503_v60  ;;  %681 = vmatpush.bf16.msra.mxu1 %v850_v57 }
 0x322   : > { %v506_v63 = vrot.slane %v505_v62, 2 }
 0x324   : > { %v507_v0 = vadd.f32 %v506_v63, %v505_v62  ;;  %682 = vmatpush.bf16.msra.mxu1 %v849_v58 }
 0x326   : > { %v508_v1 = vrot.slane %v507_v0, 1 }
 0x328   : > { %v509_v2 = vadd.f32 %v508_v1, %v507_v0 }
 0x32a   : > { %799 = vmatmul.msk.f32.vlgmr.msrb.gmra.mxu0 %vm237_vm1, %v509_v2 }
 0x3a7   : > { %v530_v3 = vpop.f32.mrf.mxu0 }
 0x3a8   : > { %v531_v4 = vadd.f32 1e-05, %v530_v3 }
 0x3aa   : > { %902 = vrsqrt.f32 %v531_v4  ;;  %vm539_vm2 = vweird.f32 %v531_v4 }
 0x3b0   : > { %v903_v5 = vpop.eup %902 }
 0x3b1   : > { %v534_v6 = vmul.f32 %v903_v5, %v531_v4  ;;  %vm540_vm15 = vweird.f32 %v903_v5 }
 0x3b2   : > { %vm541_vm3 = vmor %vm539_vm2, %vm540_vm15 }
 0x3b3   : > { %v535_v7 = vmul.f32 %v903_v5, %v534_v6 }
 0x3b5   : > { %v536_v8 = vmul.f32 0.5, %v535_v7 }
 0x3b7   : > { %v537_v9 = vsub.f32 1.5, %v536_v8  ;;  %v689_v8 = vld [vmem:[%s981_s6] sm:$0xf] }
 0x3b9   : > { %v538_v10 = vmul.f32 %v903_v5, %v537_v9  ;;  %v891_v9 = vld [vmem:[%s1086_s4 + $0x1] ss:$0 sm:$0xff] }
 0x3bb   : > { %v542_v11 = vsel %vm541_vm3, %v903_v5, %v538_v10  ;;  %v691_v10 = vunpack.c.l.bf16 %v689_v8 }
 0x3bc   : > { %v543_v12 = vperm.slane %v542_v11, 0 }
 0x3be   : > { %v544_v14 = vmul.f32 %v543_v12, %v497_v54  ;;  %v545_v15 = vmul.f32 %v543_v12, %v498_v55 }
 0x3c0   : > { %v548_v17 = vmul.f32 %v889_v13, %v544_v14  ;;  %v549_v18 = vmul.f32 %v889_v13, %v545_v15  ;;  %v690_v14 = vld [vmem:[%s981_s6 + $0x4] sm:$0x1] }
 0x3c2   : > { %v552_v19 = vadd.f32 %v890_v16, %v548_v17  ;;  %v553_v20 = vadd.f32 %v890_v16, %v549_v18  ;;  %v692_v16 = vunpack.c.l.bf16 %v690_v14 }
 0x3c4   : > { %v800_v21 = vmul.f32 -1.442695, %v552_v19  ;;  %v801_v22 = vmul.f32 -1.442695, %v553_v20 }
 0x3c6   : > { %904 = vpow2.f32 %v800_v21 }
 0x3c7   : > { %906 = vpow2.f32 %v801_v22 }
 0x3cc   : > { %v905_v23 = vpop.eup %904 }
 0x3cd   : > { %v907_v24 = vpop.eup %906  ;;  %v560_v25 = vadd.f32 1.0, %v905_v23 }
 0x3ce   : > { %v561_v27 = vadd.f32 1.0, %v907_v24 }
 0x3cf   : > { %908 = vrcp.f32 %v560_v25  ;;  %v573_v35 = vand.u32 2147483648, %v560_v25  ;;  %v571_v38 = vand.u32 2147483647, %v560_v25  ;;  %vm567_vm6 = vweird.f32 %v560_v25 }
 0x3d0   : > { %910 = vrcp.f32 %v561_v27  ;;  %v588_v39 = vand.u32 2147483648, %v561_v27  ;;  %v586_v41 = vand.u32 2147483647, %v561_v27  ;;  %vm582_vm8 = vweird.f32 %v561_v27 }
 0x3d1   : > { %v574_v43 = vor.u32 1.1754944e-38, %v573_v35  ;;  %vm572_vm9 = vcmp.eq.f32.partialorder %v571_v38, 8.507059e+37 }
 0x3d2   : > { %v589_v46 = vor.u32 1.1754944e-38, %v588_v39  ;;  %vm587_vm11 = vcmp.eq.f32.partialorder %v586_v41, 8.507059e+37 }
 0x3d5   : > { %v909_v30 = vpop.eup %908 }
 0x3d6   : > { %v911_v31 = vpop.eup %910  ;;  %v563_v32 = vmul.f32 %v909_v30, %v560_v25  ;;  %vm568_vm4 = vweird.f32 %v909_v30 }
 0x3d7   : > { %v578_v33 = vmul.f32 %v911_v31, %v561_v27  ;;  %vm583_vm5 = vweird.f32 %v911_v31  ;;  %vm569_vm7 = vmor %vm567_vm6, %vm568_vm4 }
 0x3d8   : > { %v564_v34 = vsub.f32 1.0, %v563_v32  ;;  %vm584_vm10 = vmor %vm582_vm8, %vm583_vm5 }
 0x3d9   : > { %v579_v36 = vsub.f32 1.0, %v578_v33 }
 0x3da   : > { %v565_v37 = vmul.f32 %v909_v30, %v564_v34 }
 0x3db   : > { %v580_v40 = vmul.f32 %v911_v31, %v579_v36 }
 0x3dc   : > { %v566_v42 = vadd.f32 %v909_v30, %v565_v37 }
 0x3dd   : > { %v581_v44 = vadd.f32 %v911_v31, %v580_v40 }
 0x3de   : > { %v570_v45 = vsel %vm569_vm7, %v909_v30, %v566_v42 }
 0x3df   : > { %v575_v47 = vsel %vm572_vm9, %v574_v43, %v570_v45  ;;  %v585_v48 = vsel %vm584_vm10, %v911_v31, %v581_v44 }
 0x3e0   : > { %v590_v49 = vsel %vm587_vm11, %v589_v46, %v585_v48  ;;  %v592_v50 = vmul.f32 %v575_v47, %v552_v19 }
 0x3e1   : > { %v593_v51 = vmul.f32 %v590_v49, %v553_v20  ;;  %v702_v20 = vld [vmem:[%s224_s29 + $0x4] sm:$0x1] }
 0x3e2   : > { %594 = vst.msk [vmem:[#allocation2 + $0x1] sm:$0xff] %vm237_vm1, %v592_v50 }
 0x3e3   : > { %595 = vst.msk [vmem:[#allocation2 + $0x9] sm:$0x1] %vm230_vm0, %v593_v51  ;;  %v876_v52 = vpack.i.bf16 %v593_v51, %v592_v50 }
 0x3e5   : > { %877 = vrot.lane.b32.xlu1 %v876_v52, %s921_s17 }
 0x3e9   : > { %v596_v63 = vld [vmem:[#allocation2] sm:$0xff]  ;;  %v597_v0 = vld [vmem:[#allocation2 + $0x8] sm:$0x1] }
 0x3ea   : > { %v598_v54 = vld [vmem:[#allocation2 + $0x2] sm:$0xff] }
 0x3eb   : > { %v881_v55 = vpack.i.bf16 %v599_v53, %v598_v54 }
 0x3ed   : > { %882 = vrot.lane.b32.xlu1 %v881_v55, %s922_s20 }
 0x457   : > { %v878_v59 = vpop.permute.xlu1 %877 }
 0x458   : > { %v880_v60 = vunpack.i.h.bf16 %v878_v59  ;;  %v879_v61 = vunpack.i.l.bf16 %v878_v59 }
 0x45a   : > { %v616_v3 = vsel %vm237_vm1, %v596_v63, %v879_v61  ;;  %v617_v4 = vsel %vm237_vm1, %v597_v0, %v880_v60  ;;  %vm697_vm1 = vcmask 257024  }
 0x45f   : > { %v883_v62 = vpop.permute.xlu1 %882 }
 0x460   : > { %v885_v1 = vunpack.i.h.bf16 %v883_v62  ;;  %v884_v2 = vunpack.i.l.bf16 %v883_v62 }
 0x462   : > { %v618_v5 = vsel %vm392_vm13, %v616_v3, %v884_v2  ;;  %v619_v6 = vsel %vm392_vm13, %v617_v4, %v885_v1  ;;  %vm701_vm13 = vmand %vm230_vm0, %vm700_vm12 }
 0x463   : > { %v620_v7 = vpack.c.bf16 %v619_v6, %v618_v5 }
 0x465   : > { %838 = vmatmul.msk.bf16.vlgmr.msra.gmra.mxu1 %vm446_vm14, %v620_v7 }
 0x4e2   : > { %v684_v11 = vpop.f32.mrf.mxu1 }
 0x4e3   : > { %v685_v12 = vadd.f32 %v891_v9, %v684_v11 }
 0x4e5   : > { %v693_v13 = vadd.f32 %v691_v10, %v685_v12 }
 0x4e7   : > { %v695_v15 = vpack.c.bf16 %v693_v13, %v693_v13 }
 0x4e9   : > { %698 = vst.msk [vmem:[%s224_s29] sm:$0xf] %vm697_vm1, %v695_v15 }
 0x4ea   : > { %v686_v17 = vpop.f32.mrf.mxu1 }
 0x4eb   : > { %v687_v18 = vadd.f32 %v891_v9, %v686_v17 }
 0x4ed   : > { %v694_v19 = vadd.f32 %v692_v16, %v687_v18 }
 0x4ef   : > { %v696_v21 = vpack.c.bf16 %v694_v19, %v694_v19 }
 0x4f1   : > { %v703_v22 = vsel %vm701_vm13, %v696_v21, %v702_v20 }
 0x4f2   : > { %704 = vst [vmem:[%s224_s29 + $0x4] sm:$0x1] %v703_v22 }
 0x4f3 PF: > { %s15_s18 = sadd.s32 1, %s918_s18  }
 0x4f4   : > { %p12_p4 = scmp.ge.s32.totalorder %s15_s18, 6  }
 0x4f6   :  { %14 = sbr.rel (!%p12_p4) target bundleno = 1 (0x1), region = 71 }

</bundles_post_ra>
